<compile_context>
chip_gen: v7x
topology: tpu7x:2x2x1
jax: 0.10.0
libtpu: 0.0.40
codegen_flags: <defaults>
</compile_context>

<pallas_src>
import math

import jax
import jax.numpy as jnp
from jax import lax
from jax.experimental import pallas as pl
from jax.experimental.pallas import tpu as pltpu


# ----------------------------- Config ---------------------------------------
VOCAB_SIZE = 100
TYPE_VOCAB_SIZE = 2
MAX_POS = 16
HIDDEN = 32
NUM_LAYERS = 2
NUM_HEADS = 4
HEAD_DIM = HIDDEN // NUM_HEADS
INTERMEDIATE = 64
LN_EPS = 1e-12

BATCH = 2
SEQ = 8

_SQRT1_2 = 0.7071067811865476
_ATTN_SCALE = 1.0 / math.sqrt(HEAD_DIM)


# ----------------------------- In-kernel helpers -----------------------------
def _layernorm(x, g, b):
    mu = jnp.mean(x, axis=-1, keepdims=True)
    xc = x - mu
    var = jnp.mean(xc * xc, axis=-1, keepdims=True)
    return xc * lax.rsqrt(var + LN_EPS) * g + b


def _gelu(x):
    # exact (erf) GELU, matching BERT's reference activation
    return 0.5 * x * (1.0 + lax.erf(x * _SQRT1_2))


# ----------------------------- Fused kernel ----------------------------------
def _bert_fused_kernel(
    emb_ref, mask_ref,
    emb_ln_g_ref, emb_ln_b_ref,
    qkv_w_ref, qkv_b_ref,
    ao_w_ref, ao_b_ref, a_ln_g_ref, a_ln_b_ref,
    fi_w_ref, fi_b_ref, fo_w_ref, fo_b_ref, f_ln_g_ref, f_ln_b_ref,
    pool_w_ref, pool_b_ref,
    last_ref, pool_ref,
):
    f32 = jnp.float32
    H, S, B, nH, Dh = HIDDEN, SEQ, BATCH, NUM_HEADS, HEAD_DIM

    # hoisted once: block-diagonal additive mask over all B*S rows/cols
    mask_bias = mask_ref[...]                                   # (B*S, B*S)

    # --- embeddings LayerNorm (dropout is eval-mode identity) ---
    h = _layernorm(emb_ref[...], emb_ln_g_ref[...], emb_ln_b_ref[...])  # (B*S, H)

    # --- transformer layers (static, fully unrolled) ---
    for l in range(NUM_LAYERS):
        # fused Q|K|V projection: (B*S, H) @ (H, 3H) -> (B*S, 3H)
        qkv = jnp.dot(h, qkv_w_ref[l], preferred_element_type=f32) + qkv_b_ref[l]

        # per-head attention over ALL B*S rows at once (block-diag mask
        # zeroes the cross-batch blocks after softmax)
        ctx_heads = []
        for hd in range(nH):
            c0 = hd * Dh
            qh = qkv[:, c0:c0 + Dh]                             # (B*S, Dh)
            kh = qkv[:, H + c0:H + c0 + Dh]                     # (B*S, Dh)
            vh = qkv[:, 2 * H + c0:2 * H + c0 + Dh]             # (B*S, Dh)

            # q @ k^T without an explicit transpose (contract last dims)
            s = lax.dot_general(qh, kh, (((1,), (1,)), ((), ())),
                                preferred_element_type=f32) * _ATTN_SCALE
            s = s + mask_bias                                   # (B*S, B*S)
            s = s - jnp.max(s, axis=-1, keepdims=True)
            p = jnp.exp(s)
            p = p * pl.reciprocal(jnp.sum(p, axis=-1, keepdims=True),
                                  approx=True)
            ctx_heads.append(jnp.dot(p, vh, preferred_element_type=f32))

        ctx = jnp.concatenate(ctx_heads, axis=-1)               # (B*S, H)
        attn_out = (jnp.dot(ctx, ao_w_ref[l], preferred_element_type=f32)
                    + ao_b_ref[l])
        h = _layernorm(attn_out + h, a_ln_g_ref[l], a_ln_b_ref[l])

        # feed-forward
        ffn = jnp.dot(h, fi_w_ref[l], preferred_element_type=f32) + fi_b_ref[l]
        ffn = _gelu(ffn)
        ffn = jnp.dot(ffn, fo_w_ref[l], preferred_element_type=f32) + fo_b_ref[l]
        h = _layernorm(ffn + h, f_ln_g_ref[l], f_ln_b_ref[l])

    last_ref[...] = h.astype(last_ref.dtype)

    # --- pooler: tanh(dense(.)) over the whole slab (extra rows are free),
    #     CLS rows stored directly into the output ref (no gather/concat) ---
    pooled_all = jnp.tanh(
        jnp.dot(h, pool_w_ref[...], preferred_element_type=f32) + pool_b_ref[...])
    for b in range(B):
        pool_ref[b:b + 1, :] = pooled_all[b * S:b * S + 1, :].astype(pool_ref.dtype)


# ----------------------------- Parameter init --------------------------------
def init_params(key):
    def nrm(k, shape, scale=0.02):
        return scale * jax.random.normal(k, shape, dtype=jnp.float32)

    keys = iter(jax.random.split(key, 32))
    L, H, I = NUM_LAYERS, HIDDEN, INTERMEDIATE
    return {
        "word_emb": nrm(next(keys), (VOCAB_SIZE, H)),
        "pos_emb": nrm(next(keys), (MAX_POS, H)),
        "type_emb": nrm(next(keys), (TYPE_VOCAB_SIZE, H)),
        "emb_ln_g": jnp.ones((1, H), jnp.float32),
        "emb_ln_b": jnp.zeros((1, H), jnp.float32),
        # per-layer weights stacked along a leading layer axis; Q|K|V concatenated
        "qkv_w": nrm(next(keys), (L, H, 3 * H)),
        "qkv_b": jnp.zeros((L, 1, 3 * H), jnp.float32),
        "attn_out_w": nrm(next(keys), (L, H, H)),
        "attn_out_b": jnp.zeros((L, 1, H), jnp.float32),
        "attn_ln_g": jnp.ones((L, 1, H), jnp.float32),
        "attn_ln_b": jnp.zeros((L, 1, H), jnp.float32),
        "ffn_in_w": nrm(next(keys), (L, H, I)),
        "ffn_in_b": jnp.zeros((L, 1, I), jnp.float32),
        "ffn_out_w": nrm(next(keys), (L, I, H)),
        "ffn_out_b": jnp.zeros((L, 1, H), jnp.float32),
        "ffn_ln_g": jnp.ones((L, 1, H), jnp.float32),
        "ffn_ln_b": jnp.zeros((L, 1, H), jnp.float32),
        "pool_w": nrm(next(keys), (H, H)),
        "pool_b": jnp.zeros((1, H), jnp.float32),
    }


# ----------------------------- SeqEncoder forward -----------------------------
def seq_encoder_forward(params, input_ids, attention_mask):
    """Mirrors SeqEncoder.forward: returns (last_hidden_state, pooler_output)."""
    B, S = input_ids.shape
    BS = B * S

    # block-diagonal additive mask over flattened rows, built ONCE outside the
    # kernel: same-batch keys get (1 - m) * -1e4, cross-batch keys get -1e4.
    key_bias = ((1.0 - attention_mask.astype(jnp.float32)) * -10000.0).reshape(BS)
    batch_idx = jnp.repeat(jnp.arange(B, dtype=jnp.int32), S)
    same_batch = batch_idx[:, None] == batch_idx[None, :]
    mask_bias = jnp.where(same_batch, key_bias[None, :],
                          jnp.float32(-10000.0)).astype(jnp.float32)   # (BS, BS)

    # embeddings gather (plain-JAX glue); token_type_ids default to zeros
    positions = jnp.arange(S, dtype=jnp.int32)
    emb = (jnp.take(params["word_emb"], input_ids, axis=0)
           + jnp.take(params["pos_emb"], positions, axis=0)[None, :, :]
           + params["type_emb"][0][None, None, :])
    emb2d = emb.reshape(BS, HIDDEN)

    inputs = (emb2d, mask_bias,
              params["emb_ln_g"], params["emb_ln_b"],
              params["qkv_w"], params["qkv_b"],
              params["attn_out_w"], params["attn_out_b"],
              params["attn_ln_g"], params["attn_ln_b"],
              params["ffn_in_w"], params["ffn_in_b"],
              params["ffn_out_w"], params["ffn_out_b"],
              params["ffn_ln_g"], params["ffn_ln_b"],
              params["pool_w"], params["pool_b"])

    def full_spec(a):
        nd = a.ndim
        return pl.BlockSpec(a.shape, lambda i, _nd=nd: (0,) * _nd)

    last2d, pooled = pl.pallas_call(
        _bert_fused_kernel,
        out_shape=(jax.ShapeDtypeStruct((BS, HIDDEN), jnp.float32),
                   jax.ShapeDtypeStruct((B, HIDDEN), jnp.float32)),
        grid=(1,),
        in_specs=[full_spec(x) for x in inputs],
        out_specs=(pl.BlockSpec((BS, HIDDEN), lambda i: (0, 0)),
                   pl.BlockSpec((B, HIDDEN), lambda i: (0, 0))),
        compiler_params=pltpu.CompilerParams(
            dimension_semantics=("arbitrary",)),
    )(*inputs)

    return last2d.reshape(B, S, HIDDEN), pooled


# ----------------------------- main ------------------------------------------
if __name__ == "__main__":
    key = jax.random.PRNGKey(0)
    pkey, ikey = jax.random.split(key)

    params = init_params(pkey)

    input_ids = jax.random.randint(ikey, (BATCH, SEQ), 0, VOCAB_SIZE,
                                   dtype=jnp.int32)
    # mask: first sequence full, second sequence has 2 padding tokens
    attention_mask = jnp.array(
        [[1] * SEQ, [1] * (SEQ - 2) + [0, 0]], dtype=jnp.int32)

    fwd = jax.jit(seq_encoder_forward)
    last_hidden_state, pooler_output = fwd(params, input_ids, attention_mask)
    jax.block_until_ready((last_hidden_state, pooler_output))

    assert last_hidden_state.shape == (BATCH, SEQ, HIDDEN)
    assert pooler_output.shape == (BATCH, HIDDEN)
    assert bool(jnp.all(jnp.isfinite(last_hidden_state)))
    assert bool(jnp.all(jnp.isfinite(pooler_output)))
    print("KERNEL_OK")
</pallas_src>

<mosaic_0001>
module attributes {stable_mosaic.version = 11 : i64} {
  func.func @_bert_fused_kernel(%arg0: i32, %arg1: memref<16x32xf32, #tpu.memory_space<vmem>>, %arg2: memref<16x16xf32, #tpu.memory_space<vmem>>, %arg3: memref<1x32xf32, #tpu.memory_space<vmem>>, %arg4: memref<1x32xf32, #tpu.memory_space<vmem>>, %arg5: memref<2x32x96xf32, #tpu.memory_space<vmem>>, %arg6: memref<2x1x96xf32, #tpu.memory_space<vmem>>, %arg7: memref<2x32x32xf32, #tpu.memory_space<vmem>>, %arg8: memref<2x1x32xf32, #tpu.memory_space<vmem>>, %arg9: memref<2x1x32xf32, #tpu.memory_space<vmem>>, %arg10: memref<2x1x32xf32, #tpu.memory_space<vmem>>, %arg11: memref<2x32x64xf32, #tpu.memory_space<vmem>>, %arg12: memref<2x1x64xf32, #tpu.memory_space<vmem>>, %arg13: memref<2x64x32xf32, #tpu.memory_space<vmem>>, %arg14: memref<2x1x32xf32, #tpu.memory_space<vmem>>, %arg15: memref<2x1x32xf32, #tpu.memory_space<vmem>>, %arg16: memref<2x1x32xf32, #tpu.memory_space<vmem>>, %arg17: memref<32x32xf32, #tpu.memory_space<vmem>>, %arg18: memref<1x32xf32, #tpu.memory_space<vmem>>, %arg19: memref<16x32xf32, #tpu.memory_space<vmem>>, %arg20: memref<2x32xf32, #tpu.memory_space<vmem>>) attributes {dimension_semantics = [#tpu.dimension_semantics<arbitrary>], iteration_bounds = array<i64: 1>, scalar_prefetch = 0 : i64, scratch_operands = 0 : i64, tpu.core_type = #tpu.core_type<tc>, window_params = [{pipeline_mode = #tpu.pipeline_mode<synchronous>, transform_indices = @transform_0, window_bounds = array<i64: 16, 32>}, {pipeline_mode = #tpu.pipeline_mode<synchronous>, transform_indices = @transform_1, window_bounds = array<i64: 16, 16>}, {pipeline_mode = #tpu.pipeline_mode<synchronous>, transform_indices = @transform_2, window_bounds = array<i64: 1, 32>}, {pipeline_mode = #tpu.pipeline_mode<synchronous>, transform_indices = @transform_3, window_bounds = array<i64: 1, 32>}, {pipeline_mode = #tpu.pipeline_mode<synchronous>, transform_indices = @transform_4, window_bounds = array<i64: 2, 32, 96>}, {pipeline_mode = #tpu.pipeline_mode<synchronous>, transform_indices = @transform_5, window_bounds = array<i64: 2, 1, 96>}, {pipeline_mode = #tpu.pipeline_mode<synchronous>, transform_indices = @transform_6, window_bounds = array<i64: 2, 32, 32>}, {pipeline_mode = #tpu.pipeline_mode<synchronous>, transform_indices = @transform_7, window_bounds = array<i64: 2, 1, 32>}, {pipeline_mode = #tpu.pipeline_mode<synchronous>, transform_indices = @transform_8, window_bounds = array<i64: 2, 1, 32>}, {pipeline_mode = #tpu.pipeline_mode<synchronous>, transform_indices = @transform_9, window_bounds = array<i64: 2, 1, 32>}, {pipeline_mode = #tpu.pipeline_mode<synchronous>, transform_indices = @transform_10, window_bounds = array<i64: 2, 32, 64>}, {pipeline_mode = #tpu.pipeline_mode<synchronous>, transform_indices = @transform_11, window_bounds = array<i64: 2, 1, 64>}, {pipeline_mode = #tpu.pipeline_mode<synchronous>, transform_indices = @transform_12, window_bounds = array<i64: 2, 64, 32>}, {pipeline_mode = #tpu.pipeline_mode<synchronous>, transform_indices = @transform_13, window_bounds = array<i64: 2, 1, 32>}, {pipeline_mode = #tpu.pipeline_mode<synchronous>, transform_indices = @transform_14, window_bounds = array<i64: 2, 1, 32>}, {pipeline_mode = #tpu.pipeline_mode<synchronous>, transform_indices = @transform_15, window_bounds = array<i64: 2, 1, 32>}, {pipeline_mode = #tpu.pipeline_mode<synchronous>, transform_indices = @transform_16, window_bounds = array<i64: 32, 32>}, {pipeline_mode = #tpu.pipeline_mode<synchronous>, transform_indices = @transform_17, window_bounds = array<i64: 1, 32>}, {pipeline_mode = #tpu.pipeline_mode<synchronous>, transform_indices = @transform_18, window_bounds = array<i64: 16, 32>}, {pipeline_mode = #tpu.pipeline_mode<synchronous>, transform_indices = @transform_19, window_bounds = array<i64: 2, 32>}]} {
    %c0 = arith.constant 0 : index
    %c0_0 = arith.constant 0 : index
    %0 = vector.load %arg2[%c0, %c0_0] : memref<16x16xf32, #tpu.memory_space<vmem>>, vector<16x16xf32>
    %c0_1 = arith.constant 0 : index
    %c0_2 = arith.constant 0 : index
    %1 = vector.load %arg1[%c0_1, %c0_2] : memref<16x32xf32, #tpu.memory_space<vmem>>, vector<16x32xf32>
    %c0_3 = arith.constant 0 : index
    %c0_4 = arith.constant 0 : index
    %2 = vector.load %arg3[%c0_3, %c0_4] : memref<1x32xf32, #tpu.memory_space<vmem>>, vector<1x32xf32>
    %c0_5 = arith.constant 0 : index
    %c0_6 = arith.constant 0 : index
    %3 = vector.load %arg4[%c0_5, %c0_6] : memref<1x32xf32, #tpu.memory_space<vmem>>, vector<1x32xf32>
    %cst = arith.constant dense<0.000000e+00> : vector<16xf32>
    %4 = vector.multi_reduction <add>, %1, %cst [1] : vector<16x32xf32> to vector<16xf32>
    %5 = vector.shape_cast %4 : vector<16xf32> to vector<16x1xf32>
    %cst_7 = arith.constant 3.200000e+01 : f32
    %6 = vector.broadcast %cst_7 : f32 to vector<16x1xf32>
    %7 = arith.divf %5, %6 : vector<16x1xf32>
    %8 = vector.broadcast %7 : vector<16x1xf32> to vector<16x32xf32>
    %9 = arith.subf %1, %8 : vector<16x32xf32>
    %10 = arith.mulf %9, %9 : vector<16x32xf32>
    %cst_8 = arith.constant dense<0.000000e+00> : vector<16xf32>
    %11 = vector.multi_reduction <add>, %10, %cst_8 [1] : vector<16x32xf32> to vector<16xf32>
    %12 = vector.shape_cast %11 : vector<16xf32> to vector<16x1xf32>
    %cst_9 = arith.constant 3.200000e+01 : f32
    %13 = vector.broadcast %cst_9 : f32 to vector<16x1xf32>
    %14 = arith.divf %12, %13 : vector<16x1xf32>
    %cst_10 = arith.constant 9.99999996E-13 : f32
    %15 = vector.broadcast %cst_10 : f32 to vector<16x1xf32>
    %16 = arith.addf %14, %15 : vector<16x1xf32>
    %17 = math.rsqrt %16 : vector<16x1xf32>
    %18 = vector.broadcast %17 : vector<16x1xf32> to vector<16x32xf32>
    %19 = arith.mulf %9, %18 : vector<16x32xf32>
    %20 = vector.broadcast %2 : vector<1x32xf32> to vector<16x32xf32>
    %21 = arith.mulf %19, %20 : vector<16x32xf32>
    %22 = vector.broadcast %3 : vector<1x32xf32> to vector<16x32xf32>
    %23 = arith.addf %21, %22 : vector<16x32xf32>
    %c0_11 = arith.constant 0 : index
    %c0_12 = arith.constant 0 : index
    %c0_13 = arith.constant 0 : index
    %24 = vector.load %arg5[%c0_11, %c0_12, %c0_13] : memref<2x32x96xf32, #tpu.memory_space<vmem>>, vector<1x32x96xf32>
    %25 = vector.shape_cast %24 : vector<1x32x96xf32> to vector<32x96xf32>
    %cst_14 = arith.constant dense<0.000000e+00> : vector<16x96xf32>
    %26 = tpu.matmul %23, %25, %cst_14 {dimension_numbers = #tpu.dot_dimension_numbers<[1], [0], [0], [1], [0, 0, 1, 1], [], []>} : vector<16x32xf32>, vector<32x96xf32>, vector<16x96xf32> -> vector<16x96xf32>
    %c0_15 = arith.constant 0 : index
    %c0_16 = arith.constant 0 : index
    %c0_17 = arith.constant 0 : index
    %27 = vector.load %arg6[%c0_15, %c0_16, %c0_17] : memref<2x1x96xf32, #tpu.memory_space<vmem>>, vector<1x1x96xf32>
    %28 = vector.shape_cast %27 : vector<1x1x96xf32> to vector<1x96xf32>
    %29 = vector.broadcast %28 : vector<1x96xf32> to vector<16x96xf32>
    %30 = arith.addf %26, %29 : vector<16x96xf32>
    %31 = vector.extract_strided_slice %30 {offsets = [0, 0], sizes = [16, 8], strides = [1, 1]} : vector<16x96xf32> to vector<16x8xf32>
    %32 = vector.extract_strided_slice %30 {offsets = [0, 32], sizes = [16, 8], strides = [1, 1]} : vector<16x96xf32> to vector<16x8xf32>
    %33 = vector.extract_strided_slice %30 {offsets = [0, 64], sizes = [16, 8], strides = [1, 1]} : vector<16x96xf32> to vector<16x8xf32>
    %cst_18 = arith.constant dense<0.000000e+00> : vector<16x16xf32>
    %34 = tpu.matmul %31, %32, %cst_18 {dimension_numbers = #tpu.dot_dimension_numbers<[1], [1], [0], [0], [0, 0, 1, 0], [], []>} : vector<16x8xf32>, vector<16x8xf32>, vector<16x16xf32> -> vector<16x16xf32>
    %cst_19 = arith.constant 0.353553385 : f32
    %35 = vector.broadcast %cst_19 : f32 to vector<16x16xf32>
    %36 = arith.mulf %34, %35 : vector<16x16xf32>
    %37 = arith.addf %36, %0 : vector<16x16xf32>
    %cst_20 = arith.constant dense<0xFF800000> : vector<16xf32>
    %38 = vector.multi_reduction <maximumf>, %37, %cst_20 [1] : vector<16x16xf32> to vector<16xf32>
    %39 = vector.shape_cast %38 : vector<16xf32> to vector<16x1xf32>
    %40 = vector.broadcast %39 : vector<16x1xf32> to vector<16x16xf32>
    %41 = arith.subf %37, %40 : vector<16x16xf32>
    %42 = math.exp %41 : vector<16x16xf32>
    %cst_21 = arith.constant dense<0.000000e+00> : vector<16xf32>
    %43 = vector.multi_reduction <add>, %42, %cst_21 [1] : vector<16x16xf32> to vector<16xf32>
    %44 = vector.shape_cast %43 : vector<16xf32> to vector<16x1xf32>
    %45 = tpu.reciprocal %44 {approx = true} : vector<16x1xf32> -> vector<16x1xf32>
    %46 = vector.broadcast %45 : vector<16x1xf32> to vector<16x16xf32>
    %47 = arith.mulf %42, %46 : vector<16x16xf32>
    %cst_22 = arith.constant dense<0.000000e+00> : vector<16x8xf32>
    %48 = tpu.matmul %47, %33, %cst_22 {dimension_numbers = #tpu.dot_dimension_numbers<[1], [0], [0], [1], [0, 0, 1, 1], [], []>} : vector<16x16xf32>, vector<16x8xf32>, vector<16x8xf32> -> vector<16x8xf32>
    %49 = vector.extract_strided_slice %30 {offsets = [0, 8], sizes = [16, 8], strides = [1, 1]} : vector<16x96xf32> to vector<16x8xf32>
    %50 = vector.extract_strided_slice %30 {offsets = [0, 40], sizes = [16, 8], strides = [1, 1]} : vector<16x96xf32> to vector<16x8xf32>
    %51 = vector.extract_strided_slice %30 {offsets = [0, 72], sizes = [16, 8], strides = [1, 1]} : vector<16x96xf32> to vector<16x8xf32>
    %cst_23 = arith.constant dense<0.000000e+00> : vector<16x16xf32>
    %52 = tpu.matmul %49, %50, %cst_23 {dimension_numbers = #tpu.dot_dimension_numbers<[1], [1], [0], [0], [0, 0, 1, 0], [], []>} : vector<16x8xf32>, vector<16x8xf32>, vector<16x16xf32> -> vector<16x16xf32>
    %cst_24 = arith.constant 0.353553385 : f32
    %53 = vector.broadcast %cst_24 : f32 to vector<16x16xf32>
    %54 = arith.mulf %52, %53 : vector<16x16xf32>
    %55 = arith.addf %54, %0 : vector<16x16xf32>
    %cst_25 = arith.constant dense<0xFF800000> : vector<16xf32>
    %56 = vector.multi_reduction <maximumf>, %55, %cst_25 [1] : vector<16x16xf32> to vector<16xf32>
    %57 = vector.shape_cast %56 : vector<16xf32> to vector<16x1xf32>
    %58 = vector.broadcast %57 : vector<16x1xf32> to vector<16x16xf32>
    %59 = arith.subf %55, %58 : vector<16x16xf32>
    %60 = math.exp %59 : vector<16x16xf32>
    %cst_26 = arith.constant dense<0.000000e+00> : vector<16xf32>
    %61 = vector.multi_reduction <add>, %60, %cst_26 [1] : vector<16x16xf32> to vector<16xf32>
    %62 = vector.shape_cast %61 : vector<16xf32> to vector<16x1xf32>
    %63 = tpu.reciprocal %62 {approx = true} : vector<16x1xf32> -> vector<16x1xf32>
    %64 = vector.broadcast %63 : vector<16x1xf32> to vector<16x16xf32>
    %65 = arith.mulf %60, %64 : vector<16x16xf32>
    %cst_27 = arith.constant dense<0.000000e+00> : vector<16x8xf32>
    %66 = tpu.matmul %65, %51, %cst_27 {dimension_numbers = #tpu.dot_dimension_numbers<[1], [0], [0], [1], [0, 0, 1, 1], [], []>} : vector<16x16xf32>, vector<16x8xf32>, vector<16x8xf32> -> vector<16x8xf32>
    %67 = vector.extract_strided_slice %30 {offsets = [0, 16], sizes = [16, 8], strides = [1, 1]} : vector<16x96xf32> to vector<16x8xf32>
    %68 = vector.extract_strided_slice %30 {offsets = [0, 48], sizes = [16, 8], strides = [1, 1]} : vector<16x96xf32> to vector<16x8xf32>
    %69 = vector.extract_strided_slice %30 {offsets = [0, 80], sizes = [16, 8], strides = [1, 1]} : vector<16x96xf32> to vector<16x8xf32>
    %cst_28 = arith.constant dense<0.000000e+00> : vector<16x16xf32>
    %70 = tpu.matmul %67, %68, %cst_28 {dimension_numbers = #tpu.dot_dimension_numbers<[1], [1], [0], [0], [0, 0, 1, 0], [], []>} : vector<16x8xf32>, vector<16x8xf32>, vector<16x16xf32> -> vector<16x16xf32>
    %cst_29 = arith.constant 0.353553385 : f32
    %71 = vector.broadcast %cst_29 : f32 to vector<16x16xf32>
    %72 = arith.mulf %70, %71 : vector<16x16xf32>
    %73 = arith.addf %72, %0 : vector<16x16xf32>
    %cst_30 = arith.constant dense<0xFF800000> : vector<16xf32>
    %74 = vector.multi_reduction <maximumf>, %73, %cst_30 [1] : vector<16x16xf32> to vector<16xf32>
    %75 = vector.shape_cast %74 : vector<16xf32> to vector<16x1xf32>
    %76 = vector.broadcast %75 : vector<16x1xf32> to vector<16x16xf32>
    %77 = arith.subf %73, %76 : vector<16x16xf32>
    %78 = math.exp %77 : vector<16x16xf32>
    %cst_31 = arith.constant dense<0.000000e+00> : vector<16xf32>
    %79 = vector.multi_reduction <add>, %78, %cst_31 [1] : vector<16x16xf32> to vector<16xf32>
    %80 = vector.shape_cast %79 : vector<16xf32> to vector<16x1xf32>
    %81 = tpu.reciprocal %80 {approx = true} : vector<16x1xf32> -> vector<16x1xf32>
    %82 = vector.broadcast %81 : vector<16x1xf32> to vector<16x16xf32>
    %83 = arith.mulf %78, %82 : vector<16x16xf32>
    %cst_32 = arith.constant dense<0.000000e+00> : vector<16x8xf32>
    %84 = tpu.matmul %83, %69, %cst_32 {dimension_numbers = #tpu.dot_dimension_numbers<[1], [0], [0], [1], [0, 0, 1, 1], [], []>} : vector<16x16xf32>, vector<16x8xf32>, vector<16x8xf32> -> vector<16x8xf32>
    %85 = vector.extract_strided_slice %30 {offsets = [0, 24], sizes = [16, 8], strides = [1, 1]} : vector<16x96xf32> to vector<16x8xf32>
    %86 = vector.extract_strided_slice %30 {offsets = [0, 56], sizes = [16, 8], strides = [1, 1]} : vector<16x96xf32> to vector<16x8xf32>
    %87 = vector.extract_strided_slice %30 {offsets = [0, 88], sizes = [16, 8], strides = [1, 1]} : vector<16x96xf32> to vector<16x8xf32>
    %cst_33 = arith.constant dense<0.000000e+00> : vector<16x16xf32>
    %88 = tpu.matmul %85, %86, %cst_33 {dimension_numbers = #tpu.dot_dimension_numbers<[1], [1], [0], [0], [0, 0, 1, 0], [], []>} : vector<16x8xf32>, vector<16x8xf32>, vector<16x16xf32> -> vector<16x16xf32>
    %cst_34 = arith.constant 0.353553385 : f32
    %89 = vector.broadcast %cst_34 : f32 to vector<16x16xf32>
    %90 = arith.mulf %88, %89 : vector<16x16xf32>
    %91 = arith.addf %90, %0 : vector<16x16xf32>
    %cst_35 = arith.constant dense<0xFF800000> : vector<16xf32>
    %92 = vector.multi_reduction <maximumf>, %91, %cst_35 [1] : vector<16x16xf32> to vector<16xf32>
    %93 = vector.shape_cast %92 : vector<16xf32> to vector<16x1xf32>
    %94 = vector.broadcast %93 : vector<16x1xf32> to vector<16x16xf32>
    %95 = arith.subf %91, %94 : vector<16x16xf32>
    %96 = math.exp %95 : vector<16x16xf32>
    %cst_36 = arith.constant dense<0.000000e+00> : vector<16xf32>
    %97 = vector.multi_reduction <add>, %96, %cst_36 [1] : vector<16x16xf32> to vector<16xf32>
    %98 = vector.shape_cast %97 : vector<16xf32> to vector<16x1xf32>
    %99 = tpu.reciprocal %98 {approx = true} : vector<16x1xf32> -> vector<16x1xf32>
    %100 = vector.broadcast %99 : vector<16x1xf32> to vector<16x16xf32>
    %101 = arith.mulf %96, %100 : vector<16x16xf32>
    %cst_37 = arith.constant dense<0.000000e+00> : vector<16x8xf32>
    %102 = tpu.matmul %101, %87, %cst_37 {dimension_numbers = #tpu.dot_dimension_numbers<[1], [0], [0], [1], [0, 0, 1, 1], [], []>} : vector<16x16xf32>, vector<16x8xf32>, vector<16x8xf32> -> vector<16x8xf32>
    %103 = tpu.concatenate %48, %66, %84, %102 in 1 : vector<16x8xf32>, vector<16x8xf32>, vector<16x8xf32>, vector<16x8xf32> -> vector<16x32xf32>
    %c0_38 = arith.constant 0 : index
    %c0_39 = arith.constant 0 : index
    %c0_40 = arith.constant 0 : index
    %104 = vector.load %arg7[%c0_38, %c0_39, %c0_40] : memref<2x32x32xf32, #tpu.memory_space<vmem>>, vector<1x32x32xf32>
    %105 = vector.shape_cast %104 : vector<1x32x32xf32> to vector<32x32xf32>
    %cst_41 = arith.constant dense<0.000000e+00> : vector<16x32xf32>
    %106 = tpu.matmul %103, %105, %cst_41 {dimension_numbers = #tpu.dot_dimension_numbers<[1], [0], [0], [1], [0, 0, 1, 1], [], []>} : vector<16x32xf32>, vector<32x32xf32>, vector<16x32xf32> -> vector<16x32xf32>
    %c0_42 = arith.constant 0 : index
    %c0_43 = arith.constant 0 : index
    %c0_44 = arith.constant 0 : index
    %107 = vector.load %arg8[%c0_42, %c0_43, %c0_44] : memref<2x1x32xf32, #tpu.memory_space<vmem>>, vector<1x1x32xf32>
    %108 = vector.shape_cast %107 : vector<1x1x32xf32> to vector<1x32xf32>
    %109 = vector.broadcast %108 : vector<1x32xf32> to vector<16x32xf32>
    %110 = arith.addf %106, %109 : vector<16x32xf32>
    %111 = arith.addf %110, %23 : vector<16x32xf32>
    %c0_45 = arith.constant 0 : index
    %c0_46 = arith.constant 0 : index
    %c0_47 = arith.constant 0 : index
    %112 = vector.load %arg9[%c0_45, %c0_46, %c0_47] : memref<2x1x32xf32, #tpu.memory_space<vmem>>, vector<1x1x32xf32>
    %113 = vector.shape_cast %112 : vector<1x1x32xf32> to vector<1x32xf32>
    %c0_48 = arith.constant 0 : index
    %c0_49 = arith.constant 0 : index
    %c0_50 = arith.constant 0 : index
    %114 = vector.load %arg10[%c0_48, %c0_49, %c0_50] : memref<2x1x32xf32, #tpu.memory_space<vmem>>, vector<1x1x32xf32>
    %115 = vector.shape_cast %114 : vector<1x1x32xf32> to vector<1x32xf32>
    %cst_51 = arith.constant dense<0.000000e+00> : vector<16xf32>
    %116 = vector.multi_reduction <add>, %111, %cst_51 [1] : vector<16x32xf32> to vector<16xf32>
    %117 = vector.shape_cast %116 : vector<16xf32> to vector<16x1xf32>
    %cst_52 = arith.constant 3.200000e+01 : f32
    %118 = vector.broadcast %cst_52 : f32 to vector<16x1xf32>
    %119 = arith.divf %117, %118 : vector<16x1xf32>
    %120 = vector.broadcast %119 : vector<16x1xf32> to vector<16x32xf32>
    %121 = arith.subf %111, %120 : vector<16x32xf32>
    %122 = arith.mulf %121, %121 : vector<16x32xf32>
    %cst_53 = arith.constant dense<0.000000e+00> : vector<16xf32>
    %123 = vector.multi_reduction <add>, %122, %cst_53 [1] : vector<16x32xf32> to vector<16xf32>
    %124 = vector.shape_cast %123 : vector<16xf32> to vector<16x1xf32>
    %cst_54 = arith.constant 3.200000e+01 : f32
    %125 = vector.broadcast %cst_54 : f32 to vector<16x1xf32>
    %126 = arith.divf %124, %125 : vector<16x1xf32>
    %cst_55 = arith.constant 9.99999996E-13 : f32
    %127 = vector.broadcast %cst_55 : f32 to vector<16x1xf32>
    %128 = arith.addf %126, %127 : vector<16x1xf32>
    %129 = math.rsqrt %128 : vector<16x1xf32>
    %130 = vector.broadcast %129 : vector<16x1xf32> to vector<16x32xf32>
    %131 = arith.mulf %121, %130 : vector<16x32xf32>
    %132 = vector.broadcast %113 : vector<1x32xf32> to vector<16x32xf32>
    %133 = arith.mulf %131, %132 : vector<16x32xf32>
    %134 = vector.broadcast %115 : vector<1x32xf32> to vector<16x32xf32>
    %135 = arith.addf %133, %134 : vector<16x32xf32>
    %c0_56 = arith.constant 0 : index
    %c0_57 = arith.constant 0 : index
    %c0_58 = arith.constant 0 : index
    %136 = vector.load %arg11[%c0_56, %c0_57, %c0_58] : memref<2x32x64xf32, #tpu.memory_space<vmem>>, vector<1x32x64xf32>
    %137 = vector.shape_cast %136 : vector<1x32x64xf32> to vector<32x64xf32>
    %cst_59 = arith.constant dense<0.000000e+00> : vector<16x64xf32>
    %138 = tpu.matmul %135, %137, %cst_59 {dimension_numbers = #tpu.dot_dimension_numbers<[1], [0], [0], [1], [0, 0, 1, 1], [], []>} : vector<16x32xf32>, vector<32x64xf32>, vector<16x64xf32> -> vector<16x64xf32>
    %c0_60 = arith.constant 0 : index
    %c0_61 = arith.constant 0 : index
    %c0_62 = arith.constant 0 : index
    %139 = vector.load %arg12[%c0_60, %c0_61, %c0_62] : memref<2x1x64xf32, #tpu.memory_space<vmem>>, vector<1x1x64xf32>
    %140 = vector.shape_cast %139 : vector<1x1x64xf32> to vector<1x64xf32>
    %141 = vector.broadcast %140 : vector<1x64xf32> to vector<16x64xf32>
    %142 = arith.addf %138, %141 : vector<16x64xf32>
    %cst_63 = arith.constant 5.000000e-01 : f32
    %143 = vector.broadcast %cst_63 : f32 to vector<16x64xf32>
    %144 = arith.mulf %143, %142 : vector<16x64xf32>
    %cst_64 = arith.constant 0.707106769 : f32
    %145 = vector.broadcast %cst_64 : f32 to vector<16x64xf32>
    %146 = arith.mulf %142, %145 : vector<16x64xf32>
    %147 = math.erf %146 : vector<16x64xf32>
    %cst_65 = arith.constant 1.000000e+00 : f32
    %148 = vector.broadcast %cst_65 : f32 to vector<16x64xf32>
    %149 = arith.addf %148, %147 : vector<16x64xf32>
    %150 = arith.mulf %144, %149 : vector<16x64xf32>
    %c0_66 = arith.constant 0 : index
    %c0_67 = arith.constant 0 : index
    %c0_68 = arith.constant 0 : index
    %151 = vector.load %arg13[%c0_66, %c0_67, %c0_68] : memref<2x64x32xf32, #tpu.memory_space<vmem>>, vector<1x64x32xf32>
    %152 = vector.shape_cast %151 : vector<1x64x32xf32> to vector<64x32xf32>
    %cst_69 = arith.constant dense<0.000000e+00> : vector<16x32xf32>
    %153 = tpu.matmul %150, %152, %cst_69 {dimension_numbers = #tpu.dot_dimension_numbers<[1], [0], [0], [1], [0, 0, 1, 1], [], []>} : vector<16x64xf32>, vector<64x32xf32>, vector<16x32xf32> -> vector<16x32xf32>
    %c0_70 = arith.constant 0 : index
    %c0_71 = arith.constant 0 : index
    %c0_72 = arith.constant 0 : index
    %154 = vector.load %arg14[%c0_70, %c0_71, %c0_72] : memref<2x1x32xf32, #tpu.memory_space<vmem>>, vector<1x1x32xf32>
    %155 = vector.shape_cast %154 : vector<1x1x32xf32> to vector<1x32xf32>
    %156 = vector.broadcast %155 : vector<1x32xf32> to vector<16x32xf32>
    %157 = arith.addf %153, %156 : vector<16x32xf32>
    %158 = arith.addf %157, %135 : vector<16x32xf32>
    %c0_73 = arith.constant 0 : index
    %c0_74 = arith.constant 0 : index
    %c0_75 = arith.constant 0 : index
    %159 = vector.load %arg15[%c0_73, %c0_74, %c0_75] : memref<2x1x32xf32, #tpu.memory_space<vmem>>, vector<1x1x32xf32>
    %160 = vector.shape_cast %159 : vector<1x1x32xf32> to vector<1x32xf32>
    %c0_76 = arith.constant 0 : index
    %c0_77 = arith.constant 0 : index
    %c0_78 = arith.constant 0 : index
    %161 = vector.load %arg16[%c0_76, %c0_77, %c0_78] : memref<2x1x32xf32, #tpu.memory_space<vmem>>, vector<1x1x32xf32>
    %162 = vector.shape_cast %161 : vector<1x1x32xf32> to vector<1x32xf32>
    %cst_79 = arith.constant dense<0.000000e+00> : vector<16xf32>
    %163 = vector.multi_reduction <add>, %158, %cst_79 [1] : vector<16x32xf32> to vector<16xf32>
    %164 = vector.shape_cast %163 : vector<16xf32> to vector<16x1xf32>
    %cst_80 = arith.constant 3.200000e+01 : f32
    %165 = vector.broadcast %cst_80 : f32 to vector<16x1xf32>
    %166 = arith.divf %164, %165 : vector<16x1xf32>
    %167 = vector.broadcast %166 : vector<16x1xf32> to vector<16x32xf32>
    %168 = arith.subf %158, %167 : vector<16x32xf32>
    %169 = arith.mulf %168, %168 : vector<16x32xf32>
    %cst_81 = arith.constant dense<0.000000e+00> : vector<16xf32>
    %170 = vector.multi_reduction <add>, %169, %cst_81 [1] : vector<16x32xf32> to vector<16xf32>
    %171 = vector.shape_cast %170 : vector<16xf32> to vector<16x1xf32>
    %cst_82 = arith.constant 3.200000e+01 : f32
    %172 = vector.broadcast %cst_82 : f32 to vector<16x1xf32>
    %173 = arith.divf %171, %172 : vector<16x1xf32>
    %cst_83 = arith.constant 9.99999996E-13 : f32
    %174 = vector.broadcast %cst_83 : f32 to vector<16x1xf32>
    %175 = arith.addf %173, %174 : vector<16x1xf32>
    %176 = math.rsqrt %175 : vector<16x1xf32>
    %177 = vector.broadcast %176 : vector<16x1xf32> to vector<16x32xf32>
    %178 = arith.mulf %168, %177 : vector<16x32xf32>
    %179 = vector.broadcast %160 : vector<1x32xf32> to vector<16x32xf32>
    %180 = arith.mulf %178, %179 : vector<16x32xf32>
    %181 = vector.broadcast %162 : vector<1x32xf32> to vector<16x32xf32>
    %182 = arith.addf %180, %181 : vector<16x32xf32>
    %c1 = arith.constant 1 : index
    %c0_84 = arith.constant 0 : index
    %c0_85 = arith.constant 0 : index
    %183 = vector.load %arg5[%c1, %c0_84, %c0_85] : memref<2x32x96xf32, #tpu.memory_space<vmem>>, vector<1x32x96xf32>
    %184 = vector.shape_cast %183 : vector<1x32x96xf32> to vector<32x96xf32>
    %cst_86 = arith.constant dense<0.000000e+00> : vector<16x96xf32>
    %185 = tpu.matmul %182, %184, %cst_86 {dimension_numbers = #tpu.dot_dimension_numbers<[1], [0], [0], [1], [0, 0, 1, 1], [], []>} : vector<16x32xf32>, vector<32x96xf32>, vector<16x96xf32> -> vector<16x96xf32>
    %c1_87 = arith.constant 1 : index
    %c0_88 = arith.constant 0 : index
    %c0_89 = arith.constant 0 : index
    %186 = vector.load %arg6[%c1_87, %c0_88, %c0_89] : memref<2x1x96xf32, #tpu.memory_space<vmem>>, vector<1x1x96xf32>
    %187 = vector.shape_cast %186 : vector<1x1x96xf32> to vector<1x96xf32>
    %188 = vector.broadcast %187 : vector<1x96xf32> to vector<16x96xf32>
    %189 = arith.addf %185, %188 : vector<16x96xf32>
    %190 = vector.extract_strided_slice %189 {offsets = [0, 0], sizes = [16, 8], strides = [1, 1]} : vector<16x96xf32> to vector<16x8xf32>
    %191 = vector.extract_strided_slice %189 {offsets = [0, 32], sizes = [16, 8], strides = [1, 1]} : vector<16x96xf32> to vector<16x8xf32>
    %192 = vector.extract_strided_slice %189 {offsets = [0, 64], sizes = [16, 8], strides = [1, 1]} : vector<16x96xf32> to vector<16x8xf32>
    %cst_90 = arith.constant dense<0.000000e+00> : vector<16x16xf32>
    %193 = tpu.matmul %190, %191, %cst_90 {dimension_numbers = #tpu.dot_dimension_numbers<[1], [1], [0], [0], [0, 0, 1, 0], [], []>} : vector<16x8xf32>, vector<16x8xf32>, vector<16x16xf32> -> vector<16x16xf32>
    %cst_91 = arith.constant 0.353553385 : f32
    %194 = vector.broadcast %cst_91 : f32 to vector<16x16xf32>
    %195 = arith.mulf %193, %194 : vector<16x16xf32>
    %196 = arith.addf %195, %0 : vector<16x16xf32>
    %cst_92 = arith.constant dense<0xFF800000> : vector<16xf32>
    %197 = vector.multi_reduction <maximumf>, %196, %cst_92 [1] : vector<16x16xf32> to vector<16xf32>
    %198 = vector.shape_cast %197 : vector<16xf32> to vector<16x1xf32>
    %199 = vector.broadcast %198 : vector<16x1xf32> to vector<16x16xf32>
    %200 = arith.subf %196, %199 : vector<16x16xf32>
    %201 = math.exp %200 : vector<16x16xf32>
    %cst_93 = arith.constant dense<0.000000e+00> : vector<16xf32>
    %202 = vector.multi_reduction <add>, %201, %cst_93 [1] : vector<16x16xf32> to vector<16xf32>
    %203 = vector.shape_cast %202 : vector<16xf32> to vector<16x1xf32>
    %204 = tpu.reciprocal %203 {approx = true} : vector<16x1xf32> -> vector<16x1xf32>
    %205 = vector.broadcast %204 : vector<16x1xf32> to vector<16x16xf32>
    %206 = arith.mulf %201, %205 : vector<16x16xf32>
    %cst_94 = arith.constant dense<0.000000e+00> : vector<16x8xf32>
    %207 = tpu.matmul %206, %192, %cst_94 {dimension_numbers = #tpu.dot_dimension_numbers<[1], [0], [0], [1], [0, 0, 1, 1], [], []>} : vector<16x16xf32>, vector<16x8xf32>, vector<16x8xf32> -> vector<16x8xf32>
    %208 = vector.extract_strided_slice %189 {offsets = [0, 8], sizes = [16, 8], strides = [1, 1]} : vector<16x96xf32> to vector<16x8xf32>
    %209 = vector.extract_strided_slice %189 {offsets = [0, 40], sizes = [16, 8], strides = [1, 1]} : vector<16x96xf32> to vector<16x8xf32>
    %210 = vector.extract_strided_slice %189 {offsets = [0, 72], sizes = [16, 8], strides = [1, 1]} : vector<16x96xf32> to vector<16x8xf32>
    %cst_95 = arith.constant dense<0.000000e+00> : vector<16x16xf32>
    %211 = tpu.matmul %208, %209, %cst_95 {dimension_numbers = #tpu.dot_dimension_numbers<[1], [1], [0], [0], [0, 0, 1, 0], [], []>} : vector<16x8xf32>, vector<16x8xf32>, vector<16x16xf32> -> vector<16x16xf32>
    %cst_96 = arith.constant 0.353553385 : f32
    %212 = vector.broadcast %cst_96 : f32 to vector<16x16xf32>
    %213 = arith.mulf %211, %212 : vector<16x16xf32>
    %214 = arith.addf %213, %0 : vector<16x16xf32>
    %cst_97 = arith.constant dense<0xFF800000> : vector<16xf32>
    %215 = vector.multi_reduction <maximumf>, %214, %cst_97 [1] : vector<16x16xf32> to vector<16xf32>
    %216 = vector.shape_cast %215 : vector<16xf32> to vector<16x1xf32>
    %217 = vector.broadcast %216 : vector<16x1xf32> to vector<16x16xf32>
    %218 = arith.subf %214, %217 : vector<16x16xf32>
    %219 = math.exp %218 : vector<16x16xf32>
    %cst_98 = arith.constant dense<0.000000e+00> : vector<16xf32>
    %220 = vector.multi_reduction <add>, %219, %cst_98 [1] : vector<16x16xf32> to vector<16xf32>
    %221 = vector.shape_cast %220 : vector<16xf32> to vector<16x1xf32>
    %222 = tpu.reciprocal %221 {approx = true} : vector<16x1xf32> -> vector<16x1xf32>
    %223 = vector.broadcast %222 : vector<16x1xf32> to vector<16x16xf32>
    %224 = arith.mulf %219, %223 : vector<16x16xf32>
    %cst_99 = arith.constant dense<0.000000e+00> : vector<16x8xf32>
    %225 = tpu.matmul %224, %210, %cst_99 {dimension_numbers = #tpu.dot_dimension_numbers<[1], [0], [0], [1], [0, 0, 1, 1], [], []>} : vector<16x16xf32>, vector<16x8xf32>, vector<16x8xf32> -> vector<16x8xf32>
    %226 = vector.extract_strided_slice %189 {offsets = [0, 16], sizes = [16, 8], strides = [1, 1]} : vector<16x96xf32> to vector<16x8xf32>
    %227 = vector.extract_strided_slice %189 {offsets = [0, 48], sizes = [16, 8], strides = [1, 1]} : vector<16x96xf32> to vector<16x8xf32>
    %228 = vector.extract_strided_slice %189 {offsets = [0, 80], sizes = [16, 8], strides = [1, 1]} : vector<16x96xf32> to vector<16x8xf32>
    %cst_100 = arith.constant dense<0.000000e+00> : vector<16x16xf32>
    %229 = tpu.matmul %226, %227, %cst_100 {dimension_numbers = #tpu.dot_dimension_numbers<[1], [1], [0], [0], [0, 0, 1, 0], [], []>} : vector<16x8xf32>, vector<16x8xf32>, vector<16x16xf32> -> vector<16x16xf32>
    %cst_101 = arith.constant 0.353553385 : f32
    %230 = vector.broadcast %cst_101 : f32 to vector<16x16xf32>
    %231 = arith.mulf %229, %230 : vector<16x16xf32>
    %232 = arith.addf %231, %0 : vector<16x16xf32>
    %cst_102 = arith.constant dense<0xFF800000> : vector<16xf32>
    %233 = vector.multi_reduction <maximumf>, %232, %cst_102 [1] : vector<16x16xf32> to vector<16xf32>
    %234 = vector.shape_cast %233 : vector<16xf32> to vector<16x1xf32>
    %235 = vector.broadcast %234 : vector<16x1xf32> to vector<16x16xf32>
    %236 = arith.subf %232, %235 : vector<16x16xf32>
    %237 = math.exp %236 : vector<16x16xf32>
    %cst_103 = arith.constant dense<0.000000e+00> : vector<16xf32>
    %238 = vector.multi_reduction <add>, %237, %cst_103 [1] : vector<16x16xf32> to vector<16xf32>
    %239 = vector.shape_cast %238 : vector<16xf32> to vector<16x1xf32>
    %240 = tpu.reciprocal %239 {approx = true} : vector<16x1xf32> -> vector<16x1xf32>
    %241 = vector.broadcast %240 : vector<16x1xf32> to vector<16x16xf32>
    %242 = arith.mulf %237, %241 : vector<16x16xf32>
    %cst_104 = arith.constant dense<0.000000e+00> : vector<16x8xf32>
    %243 = tpu.matmul %242, %228, %cst_104 {dimension_numbers = #tpu.dot_dimension_numbers<[1], [0], [0], [1], [0, 0, 1, 1], [], []>} : vector<16x16xf32>, vector<16x8xf32>, vector<16x8xf32> -> vector<16x8xf32>
    %244 = vector.extract_strided_slice %189 {offsets = [0, 24], sizes = [16, 8], strides = [1, 1]} : vector<16x96xf32> to vector<16x8xf32>
    %245 = vector.extract_strided_slice %189 {offsets = [0, 56], sizes = [16, 8], strides = [1, 1]} : vector<16x96xf32> to vector<16x8xf32>
    %246 = vector.extract_strided_slice %189 {offsets = [0, 88], sizes = [16, 8], strides = [1, 1]} : vector<16x96xf32> to vector<16x8xf32>
    %cst_105 = arith.constant dense<0.000000e+00> : vector<16x16xf32>
    %247 = tpu.matmul %244, %245, %cst_105 {dimension_numbers = #tpu.dot_dimension_numbers<[1], [1], [0], [0], [0, 0, 1, 0], [], []>} : vector<16x8xf32>, vector<16x8xf32>, vector<16x16xf32> -> vector<16x16xf32>
    %cst_106 = arith.constant 0.353553385 : f32
    %248 = vector.broadcast %cst_106 : f32 to vector<16x16xf32>
    %249 = arith.mulf %247, %248 : vector<16x16xf32>
    %250 = arith.addf %249, %0 : vector<16x16xf32>
    %cst_107 = arith.constant dense<0xFF800000> : vector<16xf32>
    %251 = vector.multi_reduction <maximumf>, %250, %cst_107 [1] : vector<16x16xf32> to vector<16xf32>
    %252 = vector.shape_cast %251 : vector<16xf32> to vector<16x1xf32>
    %253 = vector.broadcast %252 : vector<16x1xf32> to vector<16x16xf32>
    %254 = arith.subf %250, %253 : vector<16x16xf32>
    %255 = math.exp %254 : vector<16x16xf32>
    %cst_108 = arith.constant dense<0.000000e+00> : vector<16xf32>
    %256 = vector.multi_reduction <add>, %255, %cst_108 [1] : vector<16x16xf32> to vector<16xf32>
    %257 = vector.shape_cast %256 : vector<16xf32> to vector<16x1xf32>
    %258 = tpu.reciprocal %257 {approx = true} : vector<16x1xf32> -> vector<16x1xf32>
    %259 = vector.broadcast %258 : vector<16x1xf32> to vector<16x16xf32>
    %260 = arith.mulf %255, %259 : vector<16x16xf32>
    %cst_109 = arith.constant dense<0.000000e+00> : vector<16x8xf32>
    %261 = tpu.matmul %260, %246, %cst_109 {dimension_numbers = #tpu.dot_dimension_numbers<[1], [0], [0], [1], [0, 0, 1, 1], [], []>} : vector<16x16xf32>, vector<16x8xf32>, vector<16x8xf32> -> vector<16x8xf32>
    %262 = tpu.concatenate %207, %225, %243, %261 in 1 : vector<16x8xf32>, vector<16x8xf32>, vector<16x8xf32>, vector<16x8xf32> -> vector<16x32xf32>
    %c1_110 = arith.constant 1 : index
    %c0_111 = arith.constant 0 : index
    %c0_112 = arith.constant 0 : index
    %263 = vector.load %arg7[%c1_110, %c0_111, %c0_112] : memref<2x32x32xf32, #tpu.memory_space<vmem>>, vector<1x32x32xf32>
    %264 = vector.shape_cast %263 : vector<1x32x32xf32> to vector<32x32xf32>
    %cst_113 = arith.constant dense<0.000000e+00> : vector<16x32xf32>
    %265 = tpu.matmul %262, %264, %cst_113 {dimension_numbers = #tpu.dot_dimension_numbers<[1], [0], [0], [1], [0, 0, 1, 1], [], []>} : vector<16x32xf32>, vector<32x32xf32>, vector<16x32xf32> -> vector<16x32xf32>
    %c1_114 = arith.constant 1 : index
    %c0_115 = arith.constant 0 : index
    %c0_116 = arith.constant 0 : index
    %266 = vector.load %arg8[%c1_114, %c0_115, %c0_116] : memref<2x1x32xf32, #tpu.memory_space<vmem>>, vector<1x1x32xf32>
    %267 = vector.shape_cast %266 : vector<1x1x32xf32> to vector<1x32xf32>
    %268 = vector.broadcast %267 : vector<1x32xf32> to vector<16x32xf32>
    %269 = arith.addf %265, %268 : vector<16x32xf32>
    %270 = arith.addf %269, %182 : vector<16x32xf32>
    %c1_117 = arith.constant 1 : index
    %c0_118 = arith.constant 0 : index
    %c0_119 = arith.constant 0 : index
    %271 = vector.load %arg9[%c1_117, %c0_118, %c0_119] : memref<2x1x32xf32, #tpu.memory_space<vmem>>, vector<1x1x32xf32>
    %272 = vector.shape_cast %271 : vector<1x1x32xf32> to vector<1x32xf32>
    %c1_120 = arith.constant 1 : index
    %c0_121 = arith.constant 0 : index
    %c0_122 = arith.constant 0 : index
    %273 = vector.load %arg10[%c1_120, %c0_121, %c0_122] : memref<2x1x32xf32, #tpu.memory_space<vmem>>, vector<1x1x32xf32>
    %274 = vector.shape_cast %273 : vector<1x1x32xf32> to vector<1x32xf32>
    %cst_123 = arith.constant dense<0.000000e+00> : vector<16xf32>
    %275 = vector.multi_reduction <add>, %270, %cst_123 [1] : vector<16x32xf32> to vector<16xf32>
    %276 = vector.shape_cast %275 : vector<16xf32> to vector<16x1xf32>
    %cst_124 = arith.constant 3.200000e+01 : f32
    %277 = vector.broadcast %cst_124 : f32 to vector<16x1xf32>
    %278 = arith.divf %276, %277 : vector<16x1xf32>
    %279 = vector.broadcast %278 : vector<16x1xf32> to vector<16x32xf32>
    %280 = arith.subf %270, %279 : vector<16x32xf32>
    %281 = arith.mulf %280, %280 : vector<16x32xf32>
    %cst_125 = arith.constant dense<0.000000e+00> : vector<16xf32>
    %282 = vector.multi_reduction <add>, %281, %cst_125 [1] : vector<16x32xf32> to vector<16xf32>
    %283 = vector.shape_cast %282 : vector<16xf32> to vector<16x1xf32>
    %cst_126 = arith.constant 3.200000e+01 : f32
    %284 = vector.broadcast %cst_126 : f32 to vector<16x1xf32>
    %285 = arith.divf %283, %284 : vector<16x1xf32>
    %cst_127 = arith.constant 9.99999996E-13 : f32
    %286 = vector.broadcast %cst_127 : f32 to vector<16x1xf32>
    %287 = arith.addf %285, %286 : vector<16x1xf32>
    %288 = math.rsqrt %287 : vector<16x1xf32>
    %289 = vector.broadcast %288 : vector<16x1xf32> to vector<16x32xf32>
    %290 = arith.mulf %280, %289 : vector<16x32xf32>
    %291 = vector.broadcast %272 : vector<1x32xf32> to vector<16x32xf32>
    %292 = arith.mulf %290, %291 : vector<16x32xf32>
    %293 = vector.broadcast %274 : vector<1x32xf32> to vector<16x32xf32>
    %294 = arith.addf %292, %293 : vector<16x32xf32>
    %c1_128 = arith.constant 1 : index
    %c0_129 = arith.constant 0 : index
    %c0_130 = arith.constant 0 : index
    %295 = vector.load %arg11[%c1_128, %c0_129, %c0_130] : memref<2x32x64xf32, #tpu.memory_space<vmem>>, vector<1x32x64xf32>
    %296 = vector.shape_cast %295 : vector<1x32x64xf32> to vector<32x64xf32>
    %cst_131 = arith.constant dense<0.000000e+00> : vector<16x64xf32>
    %297 = tpu.matmul %294, %296, %cst_131 {dimension_numbers = #tpu.dot_dimension_numbers<[1], [0], [0], [1], [0, 0, 1, 1], [], []>} : vector<16x32xf32>, vector<32x64xf32>, vector<16x64xf32> -> vector<16x64xf32>
    %c1_132 = arith.constant 1 : index
    %c0_133 = arith.constant 0 : index
    %c0_134 = arith.constant 0 : index
    %298 = vector.load %arg12[%c1_132, %c0_133, %c0_134] : memref<2x1x64xf32, #tpu.memory_space<vmem>>, vector<1x1x64xf32>
    %299 = vector.shape_cast %298 : vector<1x1x64xf32> to vector<1x64xf32>
    %300 = vector.broadcast %299 : vector<1x64xf32> to vector<16x64xf32>
    %301 = arith.addf %297, %300 : vector<16x64xf32>
    %cst_135 = arith.constant 5.000000e-01 : f32
    %302 = vector.broadcast %cst_135 : f32 to vector<16x64xf32>
    %303 = arith.mulf %302, %301 : vector<16x64xf32>
    %cst_136 = arith.constant 0.707106769 : f32
    %304 = vector.broadcast %cst_136 : f32 to vector<16x64xf32>
    %305 = arith.mulf %301, %304 : vector<16x64xf32>
    %306 = math.erf %305 : vector<16x64xf32>
    %cst_137 = arith.constant 1.000000e+00 : f32
    %307 = vector.broadcast %cst_137 : f32 to vector<16x64xf32>
    %308 = arith.addf %307, %306 : vector<16x64xf32>
    %309 = arith.mulf %303, %308 : vector<16x64xf32>
    %c1_138 = arith.constant 1 : index
    %c0_139 = arith.constant 0 : index
    %c0_140 = arith.constant 0 : index
    %310 = vector.load %arg13[%c1_138, %c0_139, %c0_140] : memref<2x64x32xf32, #tpu.memory_space<vmem>>, vector<1x64x32xf32>
    %311 = vector.shape_cast %310 : vector<1x64x32xf32> to vector<64x32xf32>
    %cst_141 = arith.constant dense<0.000000e+00> : vector<16x32xf32>
    %312 = tpu.matmul %309, %311, %cst_141 {dimension_numbers = #tpu.dot_dimension_numbers<[1], [0], [0], [1], [0, 0, 1, 1], [], []>} : vector<16x64xf32>, vector<64x32xf32>, vector<16x32xf32> -> vector<16x32xf32>
    %c1_142 = arith.constant 1 : index
    %c0_143 = arith.constant 0 : index
    %c0_144 = arith.constant 0 : index
    %313 = vector.load %arg14[%c1_142, %c0_143, %c0_144] : memref<2x1x32xf32, #tpu.memory_space<vmem>>, vector<1x1x32xf32>
    %314 = vector.shape_cast %313 : vector<1x1x32xf32> to vector<1x32xf32>
    %315 = vector.broadcast %314 : vector<1x32xf32> to vector<16x32xf32>
    %316 = arith.addf %312, %315 : vector<16x32xf32>
    %317 = arith.addf %316, %294 : vector<16x32xf32>
    %c1_145 = arith.constant 1 : index
    %c0_146 = arith.constant 0 : index
    %c0_147 = arith.constant 0 : index
    %318 = vector.load %arg15[%c1_145, %c0_146, %c0_147] : memref<2x1x32xf32, #tpu.memory_space<vmem>>, vector<1x1x32xf32>
    %319 = vector.shape_cast %318 : vector<1x1x32xf32> to vector<1x32xf32>
    %c1_148 = arith.constant 1 : index
    %c0_149 = arith.constant 0 : index
    %c0_150 = arith.constant 0 : index
    %320 = vector.load %arg16[%c1_148, %c0_149, %c0_150] : memref<2x1x32xf32, #tpu.memory_space<vmem>>, vector<1x1x32xf32>
    %321 = vector.shape_cast %320 : vector<1x1x32xf32> to vector<1x32xf32>
    %cst_151 = arith.constant dense<0.000000e+00> : vector<16xf32>
    %322 = vector.multi_reduction <add>, %317, %cst_151 [1] : vector<16x32xf32> to vector<16xf32>
    %323 = vector.shape_cast %322 : vector<16xf32> to vector<16x1xf32>
    %cst_152 = arith.constant 3.200000e+01 : f32
    %324 = vector.broadcast %cst_152 : f32 to vector<16x1xf32>
    %325 = arith.divf %323, %324 : vector<16x1xf32>
    %326 = vector.broadcast %325 : vector<16x1xf32> to vector<16x32xf32>
    %327 = arith.subf %317, %326 : vector<16x32xf32>
    %328 = arith.mulf %327, %327 : vector<16x32xf32>
    %cst_153 = arith.constant dense<0.000000e+00> : vector<16xf32>
    %329 = vector.multi_reduction <add>, %328, %cst_153 [1] : vector<16x32xf32> to vector<16xf32>
    %330 = vector.shape_cast %329 : vector<16xf32> to vector<16x1xf32>
    %cst_154 = arith.constant 3.200000e+01 : f32
    %331 = vector.broadcast %cst_154 : f32 to vector<16x1xf32>
    %332 = arith.divf %330, %331 : vector<16x1xf32>
    %cst_155 = arith.constant 9.99999996E-13 : f32
    %333 = vector.broadcast %cst_155 : f32 to vector<16x1xf32>
    %334 = arith.addf %332, %333 : vector<16x1xf32>
    %335 = math.rsqrt %334 : vector<16x1xf32>
    %336 = vector.broadcast %335 : vector<16x1xf32> to vector<16x32xf32>
    %337 = arith.mulf %327, %336 : vector<16x32xf32>
    %338 = vector.broadcast %319 : vector<1x32xf32> to vector<16x32xf32>
    %339 = arith.mulf %337, %338 : vector<16x32xf32>
    %340 = vector.broadcast %321 : vector<1x32xf32> to vector<16x32xf32>
    %341 = arith.addf %339, %340 : vector<16x32xf32>
    %c0_156 = arith.constant 0 : index
    %c0_157 = arith.constant 0 : index
    %342 = vector.load %arg19[%c0_156, %c0_157] : memref<16x32xf32, #tpu.memory_space<vmem>>, vector<16x32xf32>
    tpu.vector_store %arg19[%c0_156, %c0_157], %341 {strides = array<i32>} : memref<16x32xf32, #tpu.memory_space<vmem>>, vector<16x32xf32>,
    %c0_158 = arith.constant 0 : index
    %c0_159 = arith.constant 0 : index
    %343 = vector.load %arg17[%c0_158, %c0_159] : memref<32x32xf32, #tpu.memory_space<vmem>>, vector<32x32xf32>
    %cst_160 = arith.constant dense<0.000000e+00> : vector<16x32xf32>
    %344 = tpu.matmul %341, %343, %cst_160 {dimension_numbers = #tpu.dot_dimension_numbers<[1], [0], [0], [1], [0, 0, 1, 1], [], []>} : vector<16x32xf32>, vector<32x32xf32>, vector<16x32xf32> -> vector<16x32xf32>
    %c0_161 = arith.constant 0 : index
    %c0_162 = arith.constant 0 : index
    %345 = vector.load %arg18[%c0_161, %c0_162] : memref<1x32xf32, #tpu.memory_space<vmem>>, vector<1x32xf32>
    %346 = vector.broadcast %345 : vector<1x32xf32> to vector<16x32xf32>
    %347 = arith.addf %344, %346 : vector<16x32xf32>
    %348 = math.tanh %347 : vector<16x32xf32>
    %349 = vector.extract_strided_slice %348 {offsets = [0, 0], sizes = [1, 32], strides = [1, 1]} : vector<16x32xf32> to vector<1x32xf32>
    %c0_163 = arith.constant 0 : index
    %c0_164 = arith.constant 0 : index
    %350 = vector.load %arg20[%c0_163, %c0_164] : memref<2x32xf32, #tpu.memory_space<vmem>>, vector<1x32xf32>
    tpu.vector_store %arg20[%c0_163, %c0_164], %349 {strides = array<i32>} : memref<2x32xf32, #tpu.memory_space<vmem>>, vector<1x32xf32>,
    %351 = vector.extract_strided_slice %348 {offsets = [8, 0], sizes = [1, 32], strides = [1, 1]} : vector<16x32xf32> to vector<1x32xf32>
    %c1_165 = arith.constant 1 : index
    %c0_166 = arith.constant 0 : index
    %352 = vector.load %arg20[%c1_165, %c0_166] : memref<2x32xf32, #tpu.memory_space<vmem>>, vector<1x32xf32>
    tpu.vector_store %arg20[%c1_165, %c0_166], %351 {strides = array<i32>} : memref<2x32xf32, #tpu.memory_space<vmem>>, vector<1x32xf32>,
    return
  }
  func.func @transform_0(%arg0: i32) -> (i32, i32) {
    %c0_i32 = arith.constant 0 : i32
    %c0_i32_0 = arith.constant 0 : i32
    %c0_i32_1 = arith.constant 0 : i32
    return %c0_i32, %c0_i32_0 : i32, i32
  }
  func.func @transform_1(%arg0: i32) -> (i32, i32) {
    %c0_i32 = arith.constant 0 : i32
    %c0_i32_0 = arith.constant 0 : i32
    %c0_i32_1 = arith.constant 0 : i32
    return %c0_i32, %c0_i32_0 : i32, i32
  }
  func.func @transform_2(%arg0: i32) -> (i32, i32) {
    %c0_i32 = arith.constant 0 : i32
    %c0_i32_0 = arith.constant 0 : i32
    %c0_i32_1 = arith.constant 0 : i32
    return %c0_i32, %c0_i32_0 : i32, i32
  }
  func.func @transform_3(%arg0: i32) -> (i32, i32) {
    %c0_i32 = arith.constant 0 : i32
    %c0_i32_0 = arith.constant 0 : i32
    %c0_i32_1 = arith.constant 0 : i32
    return %c0_i32, %c0_i32_0 : i32, i32
  }
  func.func @transform_4(%arg0: i32) -> (i32, i32, i32) {
    %c0_i32 = arith.constant 0 : i32
    %c0_i32_0 = arith.constant 0 : i32
    %c0_i32_1 = arith.constant 0 : i32
    %c0_i32_2 = arith.constant 0 : i32
    return %c0_i32, %c0_i32_0, %c0_i32_1 : i32, i32, i32
  }
  func.func @transform_5(%arg0: i32) -> (i32, i32, i32) {
    %c0_i32 = arith.constant 0 : i32
    %c0_i32_0 = arith.constant 0 : i32
    %c0_i32_1 = arith.constant 0 : i32
    %c0_i32_2 = arith.constant 0 : i32
    return %c0_i32, %c0_i32_0, %c0_i32_1 : i32, i32, i32
  }
  func.func @transform_6(%arg0: i32) -> (i32, i32, i32) {
    %c0_i32 = arith.constant 0 : i32
    %c0_i32_0 = arith.constant 0 : i32
    %c0_i32_1 = arith.constant 0 : i32
    %c0_i32_2 = arith.constant 0 : i32
    return %c0_i32, %c0_i32_0, %c0_i32_1 : i32, i32, i32
  }
  func.func @transform_7(%arg0: i32) -> (i32, i32, i32) {
    %c0_i32 = arith.constant 0 : i32
    %c0_i32_0 = arith.constant 0 : i32
    %c0_i32_1 = arith.constant 0 : i32
    %c0_i32_2 = arith.constant 0 : i32
    return %c0_i32, %c0_i32_0, %c0_i32_1 : i32, i32, i32
  }
  func.func @transform_8(%arg0: i32) -> (i32, i32, i32) {
    %c0_i32 = arith.constant 0 : i32
    %c0_i32_0 = arith.constant 0 : i32
    %c0_i32_1 = arith.constant 0 : i32
    %c0_i32_2 = arith.constant 0 : i32
    return %c0_i32, %c0_i32_0, %c0_i32_1 : i32, i32, i32
  }
  func.func @transform_9(%arg0: i32) -> (i32, i32, i32) {
    %c0_i32 = arith.constant 0 : i32
    %c0_i32_0 = arith.constant 0 : i32
    %c0_i32_1 = arith.constant 0 : i32
    %c0_i32_2 = arith.constant 0 : i32
    return %c0_i32, %c0_i32_0, %c0_i32_1 : i32, i32, i32
  }
  func.func @transform_10(%arg0: i32) -> (i32, i32, i32) {
    %c0_i32 = arith.constant 0 : i32
    %c0_i32_0 = arith.constant 0 : i32
    %c0_i32_1 = arith.constant 0 : i32
    %c0_i32_2 = arith.constant 0 : i32
    return %c0_i32, %c0_i32_0, %c0_i32_1 : i32, i32, i32
  }
  func.func @transform_11(%arg0: i32) -> (i32, i32, i32) {
    %c0_i32 = arith.constant 0 : i32
    %c0_i32_0 = arith.constant 0 : i32
    %c0_i32_1 = arith.constant 0 : i32
    %c0_i32_2 = arith.constant 0 : i32
    return %c0_i32, %c0_i32_0, %c0_i32_1 : i32, i32, i32
  }
  func.func @transform_12(%arg0: i32) -> (i32, i32, i32) {
    %c0_i32 = arith.constant 0 : i32
    %c0_i32_0 = arith.constant 0 : i32
    %c0_i32_1 = arith.constant 0 : i32
    %c0_i32_2 = arith.constant 0 : i32
    return %c0_i32, %c0_i32_0, %c0_i32_1 : i32, i32, i32
  }
  func.func @transform_13(%arg0: i32) -> (i32, i32, i32) {
    %c0_i32 = arith.constant 0 : i32
    %c0_i32_0 = arith.constant 0 : i32
    %c0_i32_1 = arith.constant 0 : i32
    %c0_i32_2 = arith.constant 0 : i32
    return %c0_i32, %c0_i32_0, %c0_i32_1 : i32, i32, i32
  }
  func.func @transform_14(%arg0: i32) -> (i32, i32, i32) {
    %c0_i32 = arith.constant 0 : i32
    %c0_i32_0 = arith.constant 0 : i32
    %c0_i32_1 = arith.constant 0 : i32
    %c0_i32_2 = arith.constant 0 : i32
    return %c0_i32, %c0_i32_0, %c0_i32_1 : i32, i32, i32
  }
  func.func @transform_15(%arg0: i32) -> (i32, i32, i32) {
    %c0_i32 = arith.constant 0 : i32
    %c0_i32_0 = arith.constant 0 : i32
    %c0_i32_1 = arith.constant 0 : i32
    %c0_i32_2 = arith.constant 0 : i32
    return %c0_i32, %c0_i32_0, %c0_i32_1 : i32, i32, i32
  }
  func.func @transform_16(%arg0: i32) -> (i32, i32) {
    %c0_i32 = arith.constant 0 : i32
    %c0_i32_0 = arith.constant 0 : i32
    %c0_i32_1 = arith.constant 0 : i32
    return %c0_i32, %c0_i32_0 : i32, i32
  }
  func.func @transform_17(%arg0: i32) -> (i32, i32) {
    %c0_i32 = arith.constant 0 : i32
    %c0_i32_0 = arith.constant 0 : i32
    %c0_i32_1 = arith.constant 0 : i32
    return %c0_i32, %c0_i32_0 : i32, i32
  }
  func.func @transform_18(%arg0: i32) -> (i32, i32) {
    %c0_i32 = arith.constant 0 : i32
    %c0_i32_0 = arith.constant 0 : i32
    %c0_i32_1 = arith.constant 0 : i32
    return %c0_i32, %c0_i32_0 : i32, i32
  }
  func.func @transform_19(%arg0: i32) -> (i32, i32) {
    %c0_i32 = arith.constant 0 : i32
    %c0_i32_0 = arith.constant 0 : i32
    %c0_i32_1 = arith.constant 0 : i32
    return %c0_i32, %c0_i32_0 : i32, i32
  }
}

</mosaic_0001>

<bundles_post_ra>
// kernel: seq_encoder_forward.1
= control target key start
LH: loop header
LB: loop body
LE: loop exit
PB: predicated region body
PF: predicated region fallthrough
CT: control target
= control target key end

     0   :  { %s4418_s0 = inlined_call_operand.vmem [shape: f32[16,32], index: 0, kind: input, shape index: {}]   ;;  %s4419_s1 = inlined_call_operand.vmem [shape: f32[16,16], index: 1, kind: input, shape index: {}]   ;;  %s4420_s2 = inlined_call_operand.vmem [shape: f32[1,32], index: 2, kind: input, shape index: {}]   ;;  %s4421_s3 = inlined_call_operand.vmem [shape: f32[1,32], index: 3, kind: input, shape index: {}]   ;;  %s4422_s4 = inlined_call_operand.vmem [shape: f32[2,32,96], index: 4, kind: input, shape index: {}]   ;;  %s4423_s5 = inlined_call_operand.vmem [shape: f32[2,1,96], index: 5, kind: input, shape index: {}]   ;;  %s4424_s6 = inlined_call_operand.vmem [shape: f32[2,32,32], index: 6, kind: input, shape index: {}]   ;;  %s4425_s7 = inlined_call_operand.vmem [shape: f32[2,1,32], index: 7, kind: input, shape index: {}]   ;;  %s4426_s8 = inlined_call_operand.vmem [shape: f32[2,1,32], index: 8, kind: input, shape index: {}]   ;;  %s4427_s9 = inlined_call_operand.vmem [shape: f32[2,1,32], index: 9, kind: input, shape index: {}]   ;;  %s4428_s10 = inlined_call_operand.vmem [shape: f32[2,32,64], index: 10, kind: input, shape index: {}]   ;;  %s4429_s11 = inlined_call_operand.vmem [shape: f32[2,1,64], index: 11, kind: input, shape index: {}]   ;;  %s4430_s12 = inlined_call_operand.vmem [shape: f32[2,64,32], index: 12, kind: input, shape index: {}]   ;;  %s4431_s13 = inlined_call_operand.vmem [shape: f32[2,1,32], index: 13, kind: input, shape index: {}]   ;;  %s4432_s14 = inlined_call_operand.vmem [shape: f32[2,1,32], index: 14, kind: input, shape index: {}]   ;;  %s4433_s15 = inlined_call_operand.vmem [shape: f32[2,1,32], index: 15, kind: input, shape index: {}]   ;;  %s4434_s16 = inlined_call_operand.vmem [shape: f32[32,32], index: 16, kind: input, shape index: {}]   ;;  %s4435_s17 = inlined_call_operand.vmem [shape: f32[1,32], index: 17, kind: input, shape index: {}]   ;;  %s4436_s18 = inlined_call_operand.hbm [shape: f32[16,32], index: 18, kind: output, shape index: {0}]   ;;  %s4437_s19 = inlined_call_operand.hbm [shape: f32[2,32], index: 19, kind: output, shape index: {1}]  }
   0x1   :  { %4453 = sst [smem:[#allocation8_spill]] %s4418_s0 }
   0x2   :  { %4454 = sst [smem:[#allocation9_spill]] %s4419_s1 }
   0x3   :  { %4455 = sst [smem:[#allocation10_spill]] %s4420_s2 }
   0x4   :  { %4456 = sst [smem:[#allocation11_spill]] %s4421_s3 }
   0x5   :  { %25 = vsyncpa [#allocation3], 0  ;;  %s4457_s20 = sld [smem:[#allocation8_spill]]  ;;  %vm69_vm0 = vcmask 261120  }
   0xb   :  { %v65_v0 = vld [vmem:[%s4457_s20] sm:$0xff]  ;;  %v66_v1 = vld [vmem:[%s4457_s20 + $0x8] sm:$0xff] }
   0xc   :  { %26 = vsyncpa [#allocation5], 0  ;;  %v70_v2 = vsel %vm69_vm0, %v65_v0, 0.0  ;;  %v73_v3 = vsel %vm69_vm0, %v66_v1, 0.0  ;;  %v113_v14 = vld [vmem:[%s4422_s4] sm:$0xff]  ;;  %v114_v15 = vld [vmem:[%s4422_s4 + $0x8] sm:$0xff] }
   0xd   :  { %71 = vadd.xlane.f32.xlu0 %v70_v2  ;;  %v115_v16 = vld [vmem:[%s4422_s4 + $0x10] sm:$0xff]  ;;  %v3360_v17 = vpack.c.bf16 %v114_v15, %v113_v14  ;;  %v116_v18 = vld [vmem:[%s4422_s4 + $0x18] sm:$0xff]  ;;  %s4458_s0 = sld [smem:[#allocation10_spill]]  ;;  %s4459_s21 = sld [smem:[#allocation11_spill]]  ;;  %v2896_v36 = vld [vmem:[%s4423_s5] ss:$0 sm:$0xff] }
   0xe   :  { %v3364_v19 = vpack.c.bf16 %v116_v18, %v115_v16  ;;  %vm211_vm1 = vcmask 64512   ;;  %s3771_s2 = smov 96   ;;  %s3772_s23 = smov 88   ;;  %vm299_vm3 = vcmask 130048   ;;  %vm1049_vm4 = vcmask 195584  }
   0xf   :  { %3361 = vmatprep.subr.bf16.mxu0 %v3360_v17  ;;  %s3773_s24 = smov 120   ;;  %vm3947_vm2 = vmpackc.low %vm211_vm1, %vm211_vm1  ;;  %s4462_s26 = sld [smem:[#allocation9_spill]]  ;;  %vm1307_vm5 = vcmask 523264  }
  0x10   :  { %3363 = vmatpush3.bf16.msra.mxu0 %v3360_v17  ;;  %s3774_s29 = smov 64   ;;  %s4449_s30 = smov 112  }
  0x11   :  { %74 = vadd.xlane.f32.xlu0 %v73_v3  ;;  %3365 = vmatprep.subr.bf16.mxu0 %v3364_v19  ;;  %s3777_s20 = smov 80   ;;  %s4446_s1 = smov 104  }
  0x12   :  { %s4443_s22 = smov 72   ;;  %s4442_s25 = smov 40  }
  0x13   :  { %v2894_v27 = vld [vmem:[%s4458_s0] ss:$0 sm:$0xff]  ;;  %s3775_s0 = smov 56   ;;  %s4444_s3 = smov 8  }
  0x14   :  { %3367 = vmatpush3.bf16.msra.mxu0 %v3364_v19  ;;  %v2895_v29 = vld [vmem:[%s4459_s21] ss:$0 sm:$0xff]  ;;  %s4448_s21 = smov 48   ;;  %s4440_s27 = smov 16  }
  0x15   :  { %v3960_v49 = vld [vmem:[%s4462_s26] sm:$0xff]  ;;  %v3965_v52 = vld [vmem:[%s4462_s26 + $0x8] sm:$0xff]  ;;  %s4467_s28 = smov 40  }
  0x9a   :  { %v72_v4 = vpop.xlane.xlu0 %71 }
  0x9b   :  { %v77_v5 = vmul.f32 0.03125, %v72_v4 }
  0x9d   :  { %v79_v6 = vsub.f32 %v65_v0, %v77_v5 }
  0x9e   :  { %v75_v7 = vpop.xlane.xlu0 %74 }
  0x9f   :  { %v78_v8 = vmul.f32 0.03125, %v75_v7  ;;  %v81_v9 = vmul.f32 %v79_v6, %v79_v6 }
  0xa1   :  { %v80_v10 = vsub.f32 %v66_v1, %v78_v8  ;;  %v83_v11 = vsel %vm69_vm0, %v81_v9, 0.0 }
  0xa2   :  { %84 = vadd.xlane.f32.xlu1 %v83_v11 }
  0xa3   :  { %v82_v12 = vmul.f32 %v80_v10, %v80_v10 }
  0xa5   :  { %v86_v13 = vsel %vm69_vm0, %v82_v12, 0.0 }
  0xa6   :  { %87 = vadd.xlane.f32.xlu1 %v86_v13 }
 0x12f   :  { %v85_v20 = vpop.xlane.xlu1 %84 }
 0x130   :  { %v89_v21 = vmul.f32 0.03125, %v85_v20 }
 0x132   :  { %v91_v22 = vadd.f32 1e-12, %v89_v21 }
 0x133   :  { %v88_v23 = vpop.xlane.xlu1 %87 }
 0x134   :  { %3625 = vrsqrt.f32 %v91_v22  ;;  %v90_v24 = vmul.f32 0.03125, %v88_v23 }
 0x136   :  { %v92_v25 = vadd.f32 1e-12, %v90_v24 }
 0x138   :  { %3627 = vrsqrt.f32 %v92_v25 }
 0x13e   :  { %v3626_v26 = vpop.eup %3625 }
 0x13f   :  { %v95_v28 = vmul.f32 %v3626_v26, %v79_v6 }
 0x141   :  { %v103_v30 = vmul.f32 %v2894_v27, %v95_v28 }
 0x142   :  { %v3628_v31 = vpop.eup %3627 }
 0x143   :  { %v96_v32 = vmul.f32 %v3628_v31, %v80_v10  ;;  %v3916_v33 = vadd.f32 %v2895_v29, %v103_v30 }
 0x145   :  { %v104_v34 = vmul.f32 %v2894_v27, %v96_v32  ;;  %3141 = vmatprep.mubr.msk.f32.mxu0 %vm69_vm0, %v3916_v33 }
 0x147   :  { %v3920_v35 = vadd.f32 %v2895_v29, %v104_v34 }
 0x149   :  { %3142 = vmatmul.mubr.msk.f32.vlgmr.msra.gmra.mrb[0].mxu0 %vm69_vm0, %v3920_v35 }
 0x21c   :  { %v3143_v37 = vpop.f32.mrb[0].mxu0 }
 0x21d   :  { %v3927_v38 = vadd.f32 %v3143_v37, %v2896_v36  ;;  %v196_v39 = vpop.f32.mrb[1].mxu0 }
 0x21e   :  { %v3929_v40 = vadd.f32 %v2896_v36, %v196_v39 }
 0x220   :  { %3148 = vmatprep.mubr.msk.f32.mxu1 %vm211_vm1, %v3929_v40  ;;  %v3935_v41 = vpack.i.bf16 %v3927_v38, %v3929_v40 }
 0x222   :  { %3546 = vrot.lane.b32.xlu0 %v3935_v41, %s3771_s2 }
 0x226   :  { %3556 = vrot.lane.b32.xlu0 %v3935_v41, %s3772_s23 }
 0x22a   :  { %409 = vrot.lane.b32.xlu0 %v3929_v40, %s3773_s24 }
 0x22e   :  { %411 = vrot.lane.b32.xlu0 %v3927_v38, %s3773_s24 }
 0x294   :  { %v3547_v42 = vpop.permute.xlu0 %3546 }
 0x295   :  { %v3549_v43 = vunpack.i.h.bf16 %v3547_v42  ;;  %v3548_v44 = vunpack.i.l.bf16 %v3547_v42 }
 0x297   :  { %v3368_v46 = vpack.c.bf16 %v3549_v43, %v3548_v44 }
 0x298   :  { %v3557_v5 = vpop.permute.xlu0 %3556 }
 0x299   :  { %3370 = vmatprep.subr.msk.bf16.mxu1 %vm3947_vm2, %v3368_v46  ;;  %v3559_v7 = vunpack.i.h.bf16 %v3557_v5  ;;  %v3558_v8 = vunpack.i.l.bf16 %v3557_v5 }
 0x29a   :  { %3373 = vmatpush3.bf16.xpose.msk.msra.mxu1 %vm3947_vm2, %v3368_v46 }
 0x29b   :  { %v3378_v12 = vpack.c.bf16 %v3559_v7, %v3558_v8 }
 0x29c   :  { %v410_v17 = vpop.permute.xlu0 %409 }
 0x2a0   :  { %v412_v18 = vpop.permute.xlu0 %411 }
 0x2a1   :  { %3149 = vmatmul.mubr.msk.f32.vlgmr.msra.gmra.mrb[0].mxu1 %vm211_vm1, %v3927_v38 }
 0x374   :  { %v3150_v47 = vpop.f32.mrb[0].mxu1 }
 0x375   :  { %v286_v48 = vpop.f32.mrb[1].mxu1  ;;  %v296_v50 = vmul.f32 0.35355338, %v3150_v47 }
 0x376   :  { %v295_v51 = vmul.f32 0.35355338, %v286_v48 }
 0x377   :  { %v298_v55 = vadd.f32 %v296_v50, %v3965_v52 }
 0x378   :  { %v297_v53 = vadd.f32 %v295_v51, %v3960_v49 }
 0x379   :  { %v303_v56 = vsel %vm299_vm3, %v298_v55, -inf }
 0x37a   :  { %v300_v54 = vsel %vm299_vm3, %v297_v53, -inf }
 0x37b   :  { %301 = vmax.xlane.f32.xlu1 %v300_v54 }
 0x37f   :  { %304 = vmax.xlane.f32.xlu1 %v303_v56 }
 0x408   :  { %v302_v57 = vpop.xlane.xlu1 %301 }
 0x409   :  { %v306_v58 = vsub.f32 %v297_v53, %v302_v57 }
 0x40b   :  { %v308_v61 = vmul.f32 1.442695, %v306_v58 }
 0x40c   :  { %v305_v59 = vpop.xlane.xlu1 %304 }
 0x40d   :  { %v307_v60 = vsub.f32 %v298_v55, %v305_v59 }
 0x40f   :  { %v310_v62 = vmul.f32 1.442695, %v307_v60 }
 0x411   :  { %3629 = vpow2.f32 %v310_v62 }
 0x412   :  { %3631 = vpow2.f32 %v308_v61 }
 0x41b   :  { %v3630_v63 = vpop.eup %3629 }
 0x41c   :  { %v315_v0 = vsel %vm299_vm3, %v3630_v63, 0.0  ;;  %v3632_v1 = vpop.eup %3631 }
 0x41d   :  { %316 = vadd.xlane.f32.xlu1 %v315_v0  ;;  %v312_v2 = vsel %vm299_vm3, %v3632_v1, 0.0 }
 0x421   :  { %313 = vadd.xlane.f32.xlu1 %v312_v2 }
 0x432   :  { %3551 = vrot.lane.b32.xlu1 %v3935_v41, %s3774_s29 }
 0x4aa   :  { %v317_v3 = vpop.xlane.xlu1 %316 }
 0x4ab   :  { %3633 = vrcp.f32 %v317_v3 }
 0x4ae   :  { %v314_v4 = vpop.xlane.xlu1 %313 }
 0x4af   :  { %3635 = vrcp.f32 %v314_v4 }
 0x4b2   :  { %v3552_v6 = vpop.permute.xlu1 %3551 }
 0x4b3   :  { %v3554_v9 = vunpack.i.h.bf16 %v3552_v6  ;;  %v3553_v10 = vunpack.i.l.bf16 %v3552_v6 }
 0x4b5   :  { %v3374_v11 = vpack.c.bf16 %v3554_v9, %v3553_v10  ;;  %v3634_v13 = vpop.eup %3633 }
 0x4b6   :  { %v321_v16 = vmul.f32 %v3634_v13, %v3630_v63 }
 0x4b7   :  { %3375 = vmatprep.subr.bf16.mxu1 %v3374_v11 }
 0x4b8   :  { %3377 = vmatpush3.bf16.msra.mxu1 %v3374_v11 }
 0x4b9   :  { %v3636_v14 = vpop.eup %3635  ;;  %3380 = vmatprep.subr.msk.bf16.mxu1 %vm3947_vm2, %v3378_v12 }
 0x4ba   :  { %v320_v15 = vmul.f32 %v3636_v14, %v3632_v1 }
 0x4bc   :  { %3155 = vmatprep.mubr.msk.f32.mxu1 %vm299_vm3, %v320_v15 }
 0x4bd   :  { %3156 = vmatmul.mubr.msk.f32.vlgmr.msra.gmra.mrb[2].mxu1 %vm299_vm3, %v321_v16 }
 0x4be   :  { %3162 = vmatprep.mubr.msk.f32.mxu1 %vm211_vm1, %v410_v17 }
 0x4c1   :  { %3383 = vmatpush3.bf16.xpose.msk.msra.mxu1 %vm3947_vm2, %v3378_v12 }
 0x4c8   :  { %3163 = vmatmul.mubr.msk.f32.vlgmr.msra.gmra.mrb[4].mxu1 %vm211_vm1, %v412_v18 }
 0x590   :  { %v3983_v19 = vpop.f32.mrb[2].mxu1 }
 0x591   :  { %v3985_v20 = vpop.f32.mrb[3].mxu1 }
 0x59b   :  { %v3164_v21 = vpop.f32.mrb[4].mxu1 }
 0x59c   :  { %v501_v22 = vmul.f32 0.35355338, %v3164_v21  ;;  %v491_v23 = vpop.f32.mrb[5].mxu1 }
 0x59d   :  { %v500_v24 = vmul.f32 0.35355338, %v491_v23 }
 0x59e   :  { %v503_v25 = vadd.f32 %v501_v22, %v3965_v52 }
 0x59f   :  { %v502_v26 = vadd.f32 %v500_v24, %v3960_v49 }
 0x5a0   :  { %v507_v27 = vsel %vm299_vm3, %v503_v25, -inf }
 0x5a1   :  { %508 = vmax.xlane.f32.xlu0 %v507_v27  ;;  %v504_v28 = vsel %vm299_vm3, %v502_v26, -inf }
 0x5a2   :  { %505 = vmax.xlane.f32.xlu1 %v504_v28 }
 0x5b3   :  { %3561 = vrot.lane.b32.xlu1 %v3935_v41, %s3775_s0 }
 0x5b7   :  { %613 = vrot.lane.b32.xlu1 %v3929_v40, %s4449_s30 }
 0x5bb   :  { %615 = vrot.lane.b32.xlu1 %v3927_v38, %s4449_s30  ;;  %s4468_s30 = smov 8  }
 0x62e   :  { %v509_v29 = vpop.xlane.xlu0 %508 }
 0x62f   :  { %v511_v30 = vsub.f32 %v503_v25, %v509_v29  ;;  %v506_v31 = vpop.xlane.xlu1 %505 }
 0x630   :  { %v510_v32 = vsub.f32 %v502_v26, %v506_v31 }
 0x631   :  { %v514_v34 = vmul.f32 1.442695, %v511_v30 }
 0x632   :  { %v512_v36 = vmul.f32 1.442695, %v510_v32 }
 0x633   :  { %3637 = vpow2.f32 %v514_v34  ;;  %v3562_v37 = vpop.permute.xlu1 %3561 }
 0x634   :  { %v3564_v39 = vunpack.i.h.bf16 %v3562_v37  ;;  %v3563_v42 = vunpack.i.l.bf16 %v3562_v37  ;;  %3639 = vpow2.f32 %v512_v36 }
 0x636   :  { %v3384_v43 = vpack.c.bf16 %v3564_v39, %v3563_v42 }
 0x637   :  { %v614_v61 = vpop.permute.xlu1 %613 }
 0x638   :  { %3385 = vmatprep.subr.bf16.mxu0 %v3384_v43 }
 0x639   :  { %3387 = vmatpush3.bf16.msra.mxu0 %v3384_v43 }
 0x63b   :  { %v616_v62 = vpop.permute.xlu1 %615 }
 0x63d   :  { %v3638_v44 = vpop.eup %3637 }
 0x63e   :  { %v519_v46 = vsel %vm299_vm3, %v3638_v44, 0.0  ;;  %v3640_v47 = vpop.eup %3639 }
 0x63f   :  { %520 = vadd.xlane.f32.xlu0 %v519_v46  ;;  %v516_v48 = vsel %vm299_vm3, %v3640_v47, 0.0 }
 0x643   :  { %517 = vadd.xlane.f32.xlu0 %v516_v48 }
 0x659   :  { %3566 = vrot.lane.b32.xlu0 %v3935_v41, %s3777_s20 }
 0x6cc   :  { %v521_v50 = vpop.xlane.xlu0 %520 }
 0x6cd   :  { %3641 = vrcp.f32 %v521_v50 }
 0x6d0   :  { %v518_v51 = vpop.xlane.xlu0 %517 }
 0x6d1   :  { %3643 = vrcp.f32 %v518_v51 }
 0x6d4   :  { %v3567_v53 = vpop.permute.xlu0 %3566 }
 0x6d5   :  { %v3569_v54 = vunpack.i.h.bf16 %v3567_v53  ;;  %v3568_v55 = vunpack.i.l.bf16 %v3567_v53 }
 0x6d7   :  { %v3388_v56 = vpack.c.bf16 %v3569_v54, %v3568_v55  ;;  %v3642_v57 = vpop.eup %3641 }
 0x6d8   :  { %v525_v60 = vmul.f32 %v3642_v57, %v3638_v44 }
 0x6d9   :  { %3390 = vmatprep.subr.msk.bf16.mxu0 %vm3947_vm2, %v3388_v56 }
 0x6db   :  { %v3644_v58 = vpop.eup %3643 }
 0x6dc   :  { %v524_v59 = vmul.f32 %v3644_v58, %v3640_v47 }
 0x6de   :  { %3169 = vmatprep.mubr.msk.f32.mxu0 %vm299_vm3, %v524_v59 }
 0x6df   :  { %3170 = vmatmul.mubr.msk.f32.vlgmr.msra.gmra.mrb[2].mxu0 %vm299_vm3, %v525_v60 }
 0x6e0   :  { %3393 = vmatpush3.bf16.xpose.msk.msra.mxu0 %vm3947_vm2, %v3388_v56  ;;  %3176 = vmatprep.mubr.msk.f32.mxu0 %vm211_vm1, %v614_v61 }
 0x6e7   :  { %3177 = vmatmul.mubr.msk.f32.vlgmr.msra.gmra.mrb[4].mxu0 %vm211_vm1, %v616_v62 }
 0x7b2   :  { %v4009_v63 = vpop.f32.mrb[2].mxu0 }
 0x7b3   :  { %v4011_v0 = vpop.f32.mrb[3].mxu0 }
 0x7ba   :  { %v3178_v1 = vpop.f32.mrb[4].mxu0 }
 0x7bb   :  { %v705_v2 = vmul.f32 0.35355338, %v3178_v1  ;;  %v695_v3 = vpop.f32.mrb[5].mxu0 }
 0x7bc   :  { %v704_v4 = vmul.f32 0.35355338, %v695_v3 }
 0x7bd   :  { %v707_v5 = vadd.f32 %v705_v2, %v3965_v52 }
 0x7be   :  { %v706_v6 = vadd.f32 %v704_v4, %v3960_v49 }
 0x7bf   :  { %v711_v7 = vsel %vm299_vm3, %v707_v5, -inf }
 0x7c0   :  { %712 = vmax.xlane.f32.xlu0 %v711_v7  ;;  %v708_v8 = vsel %vm299_vm3, %v706_v6, -inf }
 0x7c1   :  { %709 = vmax.xlane.f32.xlu1 %v708_v8 }
 0x7d2   :  { %3571 = vrot.lane.b32.xlu1 %v3935_v41, %s4448_s21  ;;  %s4469_s21 = smov 16  }
 0x7d6   :  { %817 = vrot.lane.b32.xlu1 %v3929_v40, %s4446_s1 }
 0x7da   :  { %819 = vrot.lane.b32.xlu1 %v3927_v38, %s4446_s1 }
 0x84d   :  { %v713_v9 = vpop.xlane.xlu0 %712 }
 0x84e   :  { %v715_v10 = vsub.f32 %v707_v5, %v713_v9  ;;  %v710_v11 = vpop.xlane.xlu1 %709  ;;  %v1052_v9 = vld [vmem:[%s4424_s6] sm:$0xff] }
 0x84f   :  { %v714_v12 = vsub.f32 %v706_v6, %v710_v11 }
 0x850   :  { %v718_v13 = vmul.f32 1.442695, %v715_v10  ;;  %v1054_v10 = vld [vmem:[%s4424_s6 + $0x10] sm:$0xff] }
 0x851   :  { %v716_v14 = vmul.f32 1.442695, %v714_v12  ;;  %v1055_v12 = vld [vmem:[%s4424_s6 + $0x18] sm:$0xff] }
 0x852   :  { %3645 = vpow2.f32 %v718_v13  ;;  %v3572_v15 = vpop.permute.xlu1 %3571  ;;  %v3412_v13 = vpack.c.bf16 %v1055_v12, %v1054_v10  ;;  %v1295_v12 = vld [vmem:[%s4430_s12 + $0x18] sm:$0xff] }
 0x853   :  { %v3574_v16 = vunpack.i.h.bf16 %v3572_v15  ;;  %v3573_v17 = vunpack.i.l.bf16 %v3572_v15  ;;  %3647 = vpow2.f32 %v716_v14 }
 0x855   :  { %v3394_v18 = vpack.c.bf16 %v3574_v16, %v3573_v17 }
 0x856   :  { %v818_v34 = vpop.permute.xlu1 %817 }
 0x857   :  { %3395 = vmatprep.subr.bf16.mxu1 %v3394_v18 }
 0x858   :  { %3397 = vmatpush3.bf16.msra.mxu1 %v3394_v18 }
 0x85a   :  { %v820_v36 = vpop.permute.xlu1 %819 }
 0x85c   :  { %v3646_v21 = vpop.eup %3645 }
 0x85d   :  { %v723_v40 = vsel %vm299_vm3, %v3646_v21, 0.0  ;;  %v3648_v22 = vpop.eup %3647 }
 0x85e   :  { %724 = vadd.xlane.f32.xlu0 %v723_v40  ;;  %v720_v38 = vsel %vm299_vm3, %v3648_v22, 0.0 }
 0x862   :  { %721 = vadd.xlane.f32.xlu0 %v720_v38 }
 0x878   :  { %3576 = vrot.lane.b32.xlu0 %v3935_v41, %s4443_s22 }
 0x8eb   :  { %v725_v23 = vpop.xlane.xlu0 %724 }
 0x8ec   :  { %3649 = vrcp.f32 %v725_v23 }
 0x8ef   :  { %v722_v24 = vpop.xlane.xlu0 %721 }
 0x8f0   :  { %3651 = vrcp.f32 %v722_v24 }
 0x8f3   :  { %v3577_v25 = vpop.permute.xlu0 %3576 }
 0x8f4   :  { %v3579_v26 = vunpack.i.h.bf16 %v3577_v25  ;;  %v3578_v27 = vunpack.i.l.bf16 %v3577_v25 }
 0x8f6   :  { %v3398_v28 = vpack.c.bf16 %v3579_v26, %v3578_v27  ;;  %v3650_v29 = vpop.eup %3649 }
 0x8f7   :  { %v729_v32 = vmul.f32 %v3650_v29, %v3646_v21 }
 0x8f8   :  { %3400 = vmatprep.subr.msk.bf16.mxu1 %vm3947_vm2, %v3398_v28 }
 0x8fa   :  { %v3652_v30 = vpop.eup %3651 }
 0x8fb   :  { %v728_v31 = vmul.f32 %v3652_v30, %v3648_v22 }
 0x8fd   :  { %3183 = vmatprep.mubr.msk.f32.mxu1 %vm299_vm3, %v728_v31 }
 0x8fe   :  { %3184 = vmatmul.mubr.msk.f32.vlgmr.msra.gmra.mrb[6].mxu1 %vm299_vm3, %v729_v32 }
 0x8ff   :  { %3403 = vmatpush3.bf16.xpose.msk.msra.mxu1 %vm3947_vm2, %v3398_v28  ;;  %3190 = vmatprep.mubr.msk.f32.mxu1 %vm211_vm1, %v818_v34 }
 0x906   :  { %3191 = vmatmul.mubr.msk.f32.vlgmr.msra.gmra.mrb[8].mxu1 %vm211_vm1, %v820_v36 }
 0x9d1   :  { %v3185_v37 = vpop.f32.mrb[6].mxu1 }
 0x9d2   :  { %v808_v39 = vpop.f32.mrb[7].mxu1 }
 0x9d9   :  { %v3192_v42 = vpop.f32.mrb[8].mxu1 }
 0x9da   :  { %v909_v43 = vmul.f32 0.35355338, %v3192_v42  ;;  %v899_v44 = vpop.f32.mrb[9].mxu1 }
 0x9db   :  { %v908_v46 = vmul.f32 0.35355338, %v899_v44 }
 0x9dc   :  { %v911_v47 = vadd.f32 %v909_v43, %v3965_v52 }
 0x9dd   :  { %v910_v48 = vadd.f32 %v908_v46, %v3960_v49 }
 0x9de   :  { %v915_v50 = vsel %vm299_vm3, %v911_v47, -inf }
 0x9df   :  { %916 = vmax.xlane.f32.xlu0 %v915_v50  ;;  %v912_v51 = vsel %vm299_vm3, %v910_v48, -inf }
 0x9e0   :  { %913 = vmax.xlane.f32.xlu1 %v912_v51  ;;  %v1191_v51 = vld [vmem:[%s4428_s10 + $0x8] sm:$0xff] }
 0x9f1   :  { %3581 = vrot.lane.b32.xlu1 %v3935_v41, %s4442_s25 }
 0x9f5   :  { %1025 = vrot.lane.b32.xlu1 %v4009_v63, %s4444_s3 }
 0x9f9   :  { %1031 = vrot.lane.b32.xlu1 %v808_v39, %s4440_s27 }
 0x9fd   :  { %1033 = vrot.lane.b32.xlu1 %v3185_v37, %s4440_s27  ;;  %s4451_s27 = smov 24  }
 0xa6c   :  { %v917_v53 = vpop.xlane.xlu0 %916 }
 0xa6d   :  { %v919_v54 = vsub.f32 %v911_v47, %v917_v53  ;;  %v914_v55 = vpop.xlane.xlu1 %913 }
 0xa6e   :  { %v918_v56 = vsub.f32 %v910_v48, %v914_v55  ;;  %v1193_v55 = vld [vmem:[%s4428_s10 + $0x18] sm:$0xff] }
 0xa6f   :  { %v922_v57 = vmul.f32 1.442695, %v919_v54  ;;  %v1192_v54 = vld [vmem:[%s4428_s10 + $0x10] sm:$0xff] }
 0xa70   :  { %v920_v58 = vmul.f32 1.442695, %v918_v56  ;;  %v3420_v56 = vpack.c.bf16 %v1193_v55, %v1192_v54 }
 0xa71   :  { %v3582_v59 = vpop.permute.xlu1 %3581 }
 0xa72   :  { %3653 = vpow2.f32 %v920_v58  ;;  %v3584_v60 = vunpack.i.h.bf16 %v3582_v59  ;;  %v3583_v61 = vunpack.i.l.bf16 %v3582_v59 }
 0xa73   :  { %3655 = vpow2.f32 %v922_v57 }
 0xa74   :  { %v3404_v41 = vpack.c.bf16 %v3584_v60, %v3583_v61 }
 0xa75   :  { %v1026_v16 = vpop.permute.xlu1 %1025 }
 0xa76   :  { %3405 = vmatprep.subr.bf16.mxu0 %v3404_v41  ;;  %v1046_v38 = vsel %vm211_vm1, %v3983_v19, %v1026_v16 }
 0xa77   :  { %3407 = vmatpush3.bf16.msra.mxu0 %v3404_v41 }
 0xa79   :  { %v1032_v17 = vpop.permute.xlu1 %1031 }
 0xa7c   :  { %v3654_v62 = vpop.eup %3653 }
 0xa7d   :  { %v924_v63 = vsel %vm299_vm3, %v3654_v62, 0.0  ;;  %v3656_v1 = vpop.eup %3655  ;;  %v1034_v21 = vpop.permute.xlu1 %1033 }
 0xa7e   :  { %925 = vadd.xlane.f32.xlu0 %v924_v63  ;;  %v927_v2 = vsel %vm299_vm3, %v3656_v1, 0.0  ;;  %v1048_v25 = vsel %vm299_vm3, %v1046_v38, %v1034_v21  ;;  %v2926_v63 = vld [vmem:[%s4426_s8] ss:$0 sm:$0xff] }
 0xa82   :  { %928 = vadd.xlane.f32.xlu0 %v927_v2  ;;  %v2927_v2 = vld [vmem:[%s4427_s9] ss:$0 sm:$0xff] }
 0xa98   :  { %1023 = vrot.lane.b32.xlu0 %v4011_v0, %s4444_s3  ;;  %v1053_v0 = vld [vmem:[%s4424_s6 + $0x8] sm:$0xff] }
 0xa99   :  { %v3408_v11 = vpack.c.bf16 %v1053_v0, %v1052_v9  ;;  %v1292_v9 = vld [vmem:[%s4430_s12] sm:$0xff]  ;;  %v1293_v0 = vld [vmem:[%s4430_s12 + $0x8] sm:$0xff] }
 0xa9a   :  { %v3424_v10 = vpack.c.bf16 %v1293_v0, %v1292_v9 }
 0xa9b   :  { %3409 = vmatprep.subr.bf16.mxu0 %v3408_v11 }
 0xb0b   :  { %v926_v3 = vpop.xlane.xlu0 %925 }
 0xb0c   :  { %3657 = vrcp.f32 %v926_v3 }
 0xb0f   :  { %v929_v4 = vpop.xlane.xlu0 %928 }
 0xb10   :  { %3659 = vrcp.f32 %v929_v4 }
 0xb13   :  { %v1024_v18 = vpop.permute.xlu0 %1023 }
 0xb14   :  { %v1045_v40 = vsel %vm211_vm1, %v3985_v20, %v1024_v18  ;;  %v2923_v20 = vld [vmem:[%s4425_s7] ss:$0 sm:$0xff]  ;;  %v1299_v18 = vld [vmem:[%s4430_s12 + $0x38] sm:$0xff] }
 0xb15   :  { %v1047_v23 = vsel %vm299_vm3, %v1045_v40, %v1032_v17  ;;  %v1298_v17 = vld [vmem:[%s4430_s12 + $0x30] sm:$0xff]  ;;  %v2928_v40 = vld [vmem:[%s4429_s11] ss:$0 sm:$0xff] }
 0xb16   :  { %v3658_v5 = vpop.eup %3657  ;;  %v3436_v21 = vpack.c.bf16 %v1299_v18, %v1298_v17 }
 0xb17   :  { %v932_v6 = vmul.f32 %v3658_v5, %v3654_v62 }
 0xb19   :  { %3197 = vmatprep.mubr.msk.f32.mxu0 %vm299_vm3, %v932_v6 }
 0xb1a   :  { %v3660_v7 = vpop.eup %3659 }
 0xb1b   :  { %v933_v8 = vmul.f32 %v3660_v7, %v3656_v1 }
 0xb1d   :  { %3198 = vmatmul.mubr.msk.f32.vlgmr.msra.gmra.mrb[6].mxu0 %vm299_vm3, %v933_v8 }
 0xb1e   :  { %3411 = vmatpush3.bf16.msra.mxu0 %v3408_v11  ;;  %v1294_v11 = vld [vmem:[%s4430_s12 + $0x10] sm:$0xff] }
 0xb1f   :  { %3413 = vmatprep.subr.bf16.mxu0 %v3412_v13 }
 0xb22   :  { %3415 = vmatpush3.bf16.msra.mxu0 %v3412_v13  ;;  %v3428_v13 = vpack.c.bf16 %v1295_v12, %v1294_v11 }
 0xb23   :  { %3425 = vmatprep.subr.bf16.mxu0 %v3424_v10 }
 0xbf0   :  { %v3199_v14 = vpop.f32.mrb[6].mxu0 }
 0xbf1   :  { %1041 = vrot.lane.b32.xlu1 %v3199_v14, %s4451_s27  ;;  %v1012_v15 = vpop.f32.mrb[7].mxu0  ;;  %v1296_v14 = vld [vmem:[%s4430_s12 + $0x20] sm:$0xff] }
 0xbf2   :  { %1039 = vrot.lane.b32.xlu0 %v1012_v15, %s4451_s27  ;;  %v1297_v15 = vld [vmem:[%s4430_s12 + $0x28] sm:$0xff] }
 0xbf3   :  { %v3432_v16 = vpack.c.bf16 %v1297_v15, %v1296_v14  ;;  %v2941_v15 = vld [vmem:[%s4423_s5 + $0x1] ss:$0 sm:$0xff]  ;;  %s4463_s5 = smov 112  }
 0xc63   :  { %v1042_v22 = vpop.permute.xlu1 %1041 }
 0xc64   :  { %v1040_v24 = vpop.permute.xlu0 %1039  ;;  %v1051_v27 = vsel %vm1049_vm4, %v1048_v25, %v1042_v22 }
 0xc65   :  { %v1050_v26 = vsel %vm1049_vm4, %v1047_v23, %v1040_v24 }
 0xc66   :  { %3208 = vmatprep.mubr.msk.f32.mxu0 %vm69_vm0, %v1050_v26 }
 0xc67   :  { %3209 = vmatmul.mubr.msk.f32.vlgmr.msra.gmra.mrb[8].mxu0 %vm69_vm0, %v1051_v27 }
 0xc68   :  { %3427 = vmatpush3.bf16.msra.mxu0 %v3424_v10  ;;  %v2935_v10 = vld [vmem:[%s4433_s15] ss:$0 sm:$0xff] }
 0xc69   :  { %3429 = vmatprep.subr.bf16.mxu0 %v3428_v13 }
 0xc6c   :  { %3431 = vmatpush3.bf16.msra.mxu0 %v3428_v13 }
 0xc6d   :  { %3433 = vmatprep.subr.bf16.mxu0 %v3432_v16 }
 0xc70   :  { %3435 = vmatpush3.bf16.msra.mxu0 %v3432_v16 }
 0xc71   :  { %3437 = vmatprep.subr.bf16.mxu0 %v3436_v21 }
 0xc74   :  { %3439 = vmatpush3.bf16.msra.mxu0 %v3436_v21 }
 0xd3a   :  { %v3210_v28 = vpop.f32.mrb[8].mxu0 }
 0xd3b   :  { %v1141_v29 = vadd.f32 %v3210_v28, %v2923_v20  ;;  %v1135_v19 = vpop.f32.mrb[9].mxu0 }
 0xd3c   :  { %v1136_v30 = vadd.f32 %v2923_v20, %v1135_v19 }
 0xd3d   :  { %v1145_v31 = vadd.f32 %v1141_v29, %v3920_v35 }
 0xd3e   :  { %v1144_v32 = vadd.f32 %v1136_v30, %v3916_v33  ;;  %v1190_v33 = vld [vmem:[%s4428_s10] sm:$0xff] }
 0xd3f   :  { %v1151_v34 = vsel %vm69_vm0, %v1145_v31, 0.0  ;;  %v3416_v53 = vpack.c.bf16 %v1191_v51, %v1190_v33 }
 0xd40   :  { %1152 = vadd.xlane.f32.xlu1 %v1151_v34  ;;  %v1148_v36 = vsel %vm69_vm0, %v1144_v32, 0.0  ;;  %v2931_v34 = vld [vmem:[%s4431_s13] ss:$0 sm:$0xff] }
 0xd41   :  { %1149 = vadd.xlane.f32.xlu0 %v1148_v36  ;;  %3417 = vmatprep.subr.bf16.mxu1 %v3416_v53 }
 0xd42   :  { %3419 = vmatpush3.bf16.msra.mxu1 %v3416_v53 }
 0xd43   :  { %3421 = vmatprep.subr.bf16.mxu1 %v3420_v56 }
 0xd46   :  { %3423 = vmatpush3.bf16.msra.mxu1 %v3420_v56 }
 0xdcd   :  { %v1153_v37 = vpop.xlane.xlu1 %1152 }
 0xdce   :  { %v1155_v39 = vmul.f32 0.03125, %v1153_v37  ;;  %v1150_v42 = vpop.xlane.xlu0 %1149 }
 0xdcf   :  { %v1154_v43 = vmul.f32 0.03125, %v1150_v42 }
 0xdd0   :  { %v1157_v44 = vsub.f32 %v1145_v31, %v1155_v39 }
 0xdd1   :  { %v1156_v46 = vsub.f32 %v1144_v32, %v1154_v43 }
 0xdd2   :  { %v1159_v50 = vmul.f32 %v1157_v44, %v1157_v44 }
 0xdd3   :  { %v1158_v47 = vmul.f32 %v1156_v46, %v1156_v46 }
 0xdd4   :  { %v1163_v35 = vsel %vm69_vm0, %v1159_v50, 0.0 }
 0xdd5   :  { %v1160_v48 = vsel %vm69_vm0, %v1158_v47, 0.0 }
 0xdd6   :  { %1161 = vadd.xlane.f32.xlu0 %v1160_v48 }
 0xdda   :  { %1164 = vadd.xlane.f32.xlu0 %v1163_v35 }
 0xe63   :  { %v1162_v57 = vpop.xlane.xlu0 %1161 }
 0xe64   :  { %v1166_v58 = vmul.f32 0.03125, %v1162_v57 }
 0xe66   :  { %v1168_v59 = vadd.f32 1e-12, %v1166_v58  ;;  %v2936_v58 = vld [vmem:[%s4422_s4 + $0x20] sm:$0xff] }
 0xe67   :  { %v1165_v60 = vpop.xlane.xlu0 %1164 }
 0xe68   :  { %3661 = vrsqrt.f32 %v1168_v59  ;;  %v1167_v61 = vmul.f32 0.03125, %v1165_v60  ;;  %v2937_v59 = vld [vmem:[%s4422_s4 + $0x28] sm:$0xff] }
 0xe69   :  { %v3440_v60 = vpack.c.bf16 %v2937_v59, %v2936_v58 }
 0xe6a   :  { %v1169_v41 = vadd.f32 1e-12, %v1167_v61  ;;  %v2938_v61 = vld [vmem:[%s4422_s4 + $0x30] sm:$0xff] }
 0xe6b   :  { %3441 = vmatprep.subr.bf16.mxu1 %v3440_v60 }
 0xe6c   :  { %3663 = vrsqrt.f32 %v1169_v41  ;;  %v2939_v41 = vld [vmem:[%s4422_s4 + $0x38] sm:$0xff] }
 0xe72   :  { %v3662_v62 = vpop.eup %3661 }
 0xe73   :  { %v1172_v1 = vmul.f32 %v3662_v62, %v1156_v46  ;;  %v3444_v62 = vpack.c.bf16 %v2939_v41, %v2938_v61 }
 0xe75   :  { %v1180_v3 = vmul.f32 %v2926_v63, %v1172_v1 }
 0xe76   :  { %v3664_v4 = vpop.eup %3663 }
 0xe77   :  { %v1173_v5 = vmul.f32 %v3664_v4, %v1157_v44  ;;  %v1188_v6 = vadd.f32 %v2927_v2, %v1180_v3 }
 0xe79   :  { %v1181_v7 = vmul.f32 %v2926_v63, %v1173_v5  ;;  %3219 = vmatprep.mubr.msk.f32.mxu1 %vm69_vm0, %v1188_v6 }
 0xe7b   :  { %v1189_v8 = vadd.f32 %v2927_v2, %v1181_v7  ;;  %v2934_v7 = vld [vmem:[%s4432_s14] ss:$0 sm:$0xff] }
 0xe7d   :  { %3220 = vmatmul.mubr.msk.f32.vlgmr.msra.gmra.mrb[10].mxu1 %vm69_vm0, %v1189_v8 }
 0xe7e   :  { %3443 = vmatpush3.bf16.msra.mxu1 %v3440_v60 }
 0xe7f   :  { %3445 = vmatprep.subr.bf16.mxu1 %v3444_v62 }
 0xe82   :  { %3447 = vmatpush3.bf16.msra.mxu1 %v3444_v62 }
 0xf50   :  { %v3221_v22 = vpop.f32.mrb[10].mxu1 }
 0xf51   :  { %v1279_v38 = vadd.f32 %v3221_v22, %v2928_v40  ;;  %v1273_v23 = vpop.f32.mrb[11].mxu1 }
 0xf52   :  { %v1274_v24 = vadd.f32 %v2928_v40, %v1273_v23 }
 0xf53   :  { %v1285_v25 = vmul.f32 0.70710677, %v1279_v38  ;;  %v1283_v30 = vmul.f32 0.5, %v1279_v38 }
 0xf54   :  { %v1284_v26 = vmul.f32 0.70710677, %v1274_v24  ;;  %v1282_v29 = vmul.f32 0.5, %v1274_v24 }
 0xf55   :  { %3665 = verf.f32 %v1285_v25 }
 0xf56   :  { %3667 = verf.f32 %v1284_v26 }
 0xf5f   :  { %v3666_v27 = vpop.eup %3665 }
 0xf60   :  { %v3668_v20 = vpop.eup %3667  ;;  %v1289_v28 = vadd.f32 1.0, %v3666_v27 }
 0xf61   :  { %v1288_v19 = vadd.f32 1.0, %v3668_v20 }
 0xf62   :  { %v1291_v32 = vmul.f32 %v1289_v28, %v1283_v30 }
 0xf63   :  { %v1290_v31 = vmul.f32 %v1288_v19, %v1282_v29 }
 0xf65   :  { %3238 = vmatprep.mubr.msk.f32.mxu0 %vm1307_vm5, %v1290_v31 }
 0xf66   :  { %3239 = vmatmul.mubr.msk.f32.vlgmr.msra.gmra.mrb[10].mxu0 %vm1307_vm5, %v1291_v32 }
0x1039   :  { %v3240_v36 = vpop.f32.mrb[10].mxu0 }
0x103a   :  { %v1386_v37 = vadd.f32 %v3240_v36, %v2931_v34  ;;  %v1380_v39 = vpop.f32.mrb[11].mxu0 }
0x103b   :  { %v1381_v42 = vadd.f32 %v2931_v34, %v1380_v39 }
0x103c   :  { %v1390_v43 = vadd.f32 %v1386_v37, %v1189_v8 }
0x103d   :  { %v1389_v44 = vadd.f32 %v1381_v42, %v1188_v6 }
0x103e   :  { %v1396_v46 = vsel %vm69_vm0, %v1390_v43, 0.0 }
0x103f   :  { %1397 = vadd.xlane.f32.xlu1 %v1396_v46  ;;  %v1393_v47 = vsel %vm69_vm0, %v1389_v44, 0.0 }
0x1040   :  { %1394 = vadd.xlane.f32.xlu0 %v1393_v47 }
0x10cc   :  { %v1398_v48 = vpop.xlane.xlu1 %1397 }
0x10cd   :  { %v1400_v50 = vmul.f32 0.03125, %v1398_v48  ;;  %v1395_v35 = vpop.xlane.xlu0 %1394 }
0x10ce   :  { %v1399_v33 = vmul.f32 0.03125, %v1395_v35 }
0x10cf   :  { %v1402_v51 = vsub.f32 %v1390_v43, %v1400_v50 }
0x10d0   :  { %v1401_v53 = vsub.f32 %v1389_v44, %v1399_v33 }
0x10d1   :  { %v1404_v54 = vmul.f32 %v1402_v51, %v1402_v51 }
0x10d2   :  { %v1403_v55 = vmul.f32 %v1401_v53, %v1401_v53 }
0x10d3   :  { %v1408_v56 = vsel %vm69_vm0, %v1404_v54, 0.0 }
0x10d4   :  { %1409 = vadd.xlane.f32.xlu1 %v1408_v56  ;;  %v1405_v57 = vsel %vm69_vm0, %v1403_v55, 0.0 }
0x10d5   :  { %1406 = vadd.xlane.f32.xlu0 %v1405_v57 }
0x1161   :  { %v1410_v63 = vpop.xlane.xlu1 %1409 }
0x1162   :  { %v1412_v1 = vmul.f32 0.03125, %v1410_v63  ;;  %v1407_v2 = vpop.xlane.xlu0 %1406 }
0x1163   :  { %v1411_v3 = vmul.f32 0.03125, %v1407_v2 }
0x1164   :  { %v1414_v4 = vadd.f32 1e-12, %v1412_v1 }
0x1165   :  { %v1413_v5 = vadd.f32 1e-12, %v1411_v3 }
0x1166   :  { %3669 = vrsqrt.f32 %v1414_v4 }
0x1167   :  { %3671 = vrsqrt.f32 %v1413_v5 }
0x1170   :  { %v3670_v6 = vpop.eup %3669 }
0x1171   :  { %v3672_v8 = vpop.eup %3671  ;;  %v1418_v9 = vmul.f32 %v3670_v6, %v1402_v51 }
0x1172   :  { %v1417_v0 = vmul.f32 %v3672_v8, %v1401_v53 }
0x1173   :  { %v1426_v11 = vmul.f32 %v2934_v7, %v1418_v9 }
0x1174   :  { %v1425_v12 = vmul.f32 %v2934_v7, %v1417_v0 }
0x1175   :  { %v4160_v14 = vadd.f32 %v2935_v10, %v1426_v11 }
0x1176   :  { %v4158_v13 = vadd.f32 %v2935_v10, %v1425_v12 }
0x1178   :  { %3249 = vmatprep.mubr.msk.f32.mxu1 %vm69_vm0, %v4158_v13 }
0x1179   :  { %3250 = vmatmul.mubr.msk.f32.vlgmr.msra.gmra.mrb[12].mxu1 %vm69_vm0, %v4160_v14 }
0x124c   :  { %v3251_v16 = vpop.f32.mrb[12].mxu1 }
0x124d   :  { %v4169_v17 = vadd.f32 %v3251_v16, %v2941_v15  ;;  %v1520_v18 = vpop.f32.mrb[13].mxu1 }
0x124e   :  { %v4171_v21 = vadd.f32 %v2941_v15, %v1520_v18 }
0x1250   :  { %3256 = vmatprep.mubr.msk.f32.mxu1 %vm211_vm1, %v4171_v21  ;;  %v4177_v40 = vpack.i.bf16 %v4169_v17, %v4171_v21 }
0x1252   :  { %3591 = vrot.lane.b32.xlu1 %v4177_v40, %s3772_s23  ;;  %3586 = vrot.lane.b32.xlu0 %v4177_v40, %s3771_s2  ;;  %s4470_s23 = smov 24  }
0x1256   :  { %1731 = vrot.lane.b32.xlu1 %v4171_v21, %s3773_s24 }
0x125a   :  { %1733 = vrot.lane.b32.xlu1 %v4169_v17, %s3773_s24 }
0x12c4   :  { %v3592_v22 = vpop.permute.xlu1 %3591  ;;  %v3587_v38 = vpop.permute.xlu0 %3586 }
0x12c5   :  { %v3594_v23 = vunpack.i.h.bf16 %v3592_v22  ;;  %v3593_v24 = vunpack.i.l.bf16 %v3592_v22  ;;  %v3589_v25 = vunpack.i.h.bf16 %v3587_v38  ;;  %v3588_v26 = vunpack.i.l.bf16 %v3587_v38 }
0x12c7   :  { %v3448_v27 = vpack.c.bf16 %v3589_v25, %v3588_v26  ;;  %v3458_v20 = vpack.c.bf16 %v3594_v23, %v3593_v24 }
0x12c8   :  { %v1732_v28 = vpop.permute.xlu1 %1731 }
0x12c9   :  { %3450 = vmatprep.subr.msk.bf16.mxu1 %vm3947_vm2, %v3448_v27 }
0x12ca   :  { %3453 = vmatpush3.bf16.xpose.msk.msra.mxu1 %vm3947_vm2, %v3448_v27 }
0x12cb   :  { %3460 = vmatprep.subr.msk.bf16.mxu1 %vm3947_vm2, %v3458_v20 }
0x12cc   :  { %v1734_v29 = vpop.permute.xlu1 %1733 }
0x12d1   :  { %3257 = vmatmul.mubr.msk.f32.vlgmr.msra.gmra.mrb[14].mxu1 %vm211_vm1, %v4169_v17 }
0x12d2   :  { %3463 = vmatpush3.bf16.xpose.msk.msra.mxu1 %vm3947_vm2, %v3458_v20  ;;  %3270 = vmatprep.mubr.msk.f32.mxu1 %vm211_vm1, %v1732_v28 }
0x12d9   :  { %3271 = vmatmul.mubr.msk.f32.vlgmr.msra.gmra.mrb[16].mxu1 %vm211_vm1, %v1734_v29 }
0x13a4   :  { %v3258_v19 = vpop.f32.mrb[14].mxu1 }
0x13a5   :  { %v1619_v30 = vmul.f32 0.35355338, %v3258_v19  ;;  %v1609_v31 = vpop.f32.mrb[15].mxu1 }
0x13a6   :  { %v1618_v32 = vmul.f32 0.35355338, %v1609_v31 }
0x13a7   :  { %v1621_v34 = vadd.f32 %v1619_v30, %v3965_v52 }
0x13a8   :  { %v1620_v36 = vadd.f32 %v1618_v32, %v3960_v49 }
0x13a9   :  { %v1625_v37 = vsel %vm299_vm3, %v1621_v34, -inf }
0x13aa   :  { %1626 = vmax.xlane.f32.xlu1 %v1625_v37  ;;  %v1622_v39 = vsel %vm299_vm3, %v1620_v36, -inf }
0x13ab   :  { %1623 = vmax.xlane.f32.xlu0 %v1622_v39 }
0x13ac   :  { %v3272_v42 = vpop.f32.mrb[16].mxu1 }
0x13ad   :  { %v1813_v43 = vpop.f32.mrb[17].mxu1  ;;  %v1823_v44 = vmul.f32 0.35355338, %v3272_v42 }
0x13ae   :  { %v1822_v46 = vmul.f32 0.35355338, %v1813_v43 }
0x13af   :  { %v1825_v50 = vadd.f32 %v1823_v44, %v3965_v52 }
0x13b0   :  { %v1824_v47 = vadd.f32 %v1822_v46, %v3960_v49 }
0x13b1   :  { %v1829_v35 = vsel %vm299_vm3, %v1825_v50, -inf }
0x13b2   :  { %v1826_v48 = vsel %vm299_vm3, %v1824_v47, -inf }
0x13b3   :  { %1827 = vmax.xlane.f32.xlu0 %v1826_v48 }
0x13b7   :  { %1830 = vmax.xlane.f32.xlu0 %v1829_v35 }
0x1437   :  { %v1627_v33 = vpop.xlane.xlu1 %1626 }
0x1438   :  { %v1629_v51 = vsub.f32 %v1621_v34, %v1627_v33  ;;  %v1624_v53 = vpop.xlane.xlu0 %1623 }
0x1439   :  { %v1628_v54 = vsub.f32 %v1620_v36, %v1624_v53 }
0x143a   :  { %v1632_v55 = vmul.f32 1.442695, %v1629_v51 }
0x143b   :  { %v1630_v56 = vmul.f32 1.442695, %v1628_v54 }
0x143c   :  { %3673 = vpow2.f32 %v1632_v55 }
0x143d   :  { %3675 = vpow2.f32 %v1630_v56 }
0x1440   :  { %v1828_v57 = vpop.xlane.xlu0 %1827 }
0x1441   :  { %v1832_v58 = vsub.f32 %v1824_v47, %v1828_v57  ;;  %v3721_v47 = vld [vmem:[%s4462_s26 + $0x8] sm:$0xff] }
0x1443   :  { %v1834_v59 = vmul.f32 1.442695, %v1832_v58 }
0x1444   :  { %v1831_v49 = vpop.xlane.xlu0 %1830 }
0x1445   :  { %3677 = vpow2.f32 %v1834_v59  ;;  %v1833_v60 = vsub.f32 %v1825_v50, %v1831_v49  ;;  %v3722_v50 = vld [vmem:[%s4462_s26] sm:$0xff]  ;;  %s4466_s26 = smov 72  }
0x1446   :  { %v3674_v61 = vpop.eup %3673 }
0x1447   :  { %v3676_v52 = vpop.eup %3675  ;;  %v1836_v41 = vmul.f32 1.442695, %v1833_v60  ;;  %v1637_v62 = vsel %vm299_vm3, %v3674_v61, 0.0 }
0x1448   :  { %1638 = vadd.xlane.f32.xlu1 %v1637_v62  ;;  %v1634_v63 = vsel %vm299_vm3, %v3676_v52, 0.0 }
0x1449   :  { %3679 = vpow2.f32 %v1836_v41  ;;  %1635 = vadd.xlane.f32.xlu0 %v1634_v63 }
0x144f   :  { %v3678_v1 = vpop.eup %3677 }
0x1450   :  { %v1838_v2 = vsel %vm299_vm3, %v3678_v1, 0.0 }
0x1451   :  { %1839 = vadd.xlane.f32.xlu0 %v1838_v2 }
0x1453   :  { %v3680_v3 = vpop.eup %3679 }
0x1454   :  { %v1841_v4 = vsel %vm299_vm3, %v3680_v3, 0.0 }
0x1455   :  { %1842 = vadd.xlane.f32.xlu1 %v1841_v4 }
0x1466   :  { %3601 = vrot.lane.b32.xlu1 %v4177_v40, %s3775_s0  ;;  %s4464_s0 = smov 48  }
0x1467   :  { %3596 = vrot.lane.b32.xlu0 %v4177_v40, %s3774_s29 }
0x146a   :  { %3606 = vrot.lane.b32.xlu1 %v4177_v40, %s3777_s20  ;;  %s4465_s20 = smov 104  }
0x146b   :  { %1937 = vrot.lane.b32.xlu0 %v4169_v17, %s4463_s5 }
0x146e   :  { %1935 = vrot.lane.b32.xlu1 %v4171_v21, %s4463_s5 }
0x14d5   :  { %v1639_v6 = vpop.xlane.xlu1 %1638 }
0x14d6   :  { %v1636_v5 = vpop.xlane.xlu0 %1635 }
0x14d7   :  { %3681 = vrcp.f32 %v1636_v5 }
0x14d8   :  { %3683 = vrcp.f32 %v1639_v6 }
0x14de   :  { %v1840_v7 = vpop.xlane.xlu0 %1839 }
0x14df   :  { %3685 = vrcp.f32 %v1840_v7 }
0x14e1   :  { %v3682_v8 = vpop.eup %3681 }
0x14e2   :  { %v1843_v9 = vpop.xlane.xlu1 %1842  ;;  %v3597_v0 = vpop.permute.xlu0 %3596  ;;  %v1642_v10 = vmul.f32 %v3682_v8, %v3676_v52 }
0x14e3   :  { %3687 = vrcp.f32 %v1843_v9  ;;  %v3599_v11 = vunpack.i.h.bf16 %v3597_v0  ;;  %v3598_v12 = vunpack.i.l.bf16 %v3597_v0  ;;  %v3684_v16 = vpop.eup %3683 }
0x14e4   :  { %3263 = vmatprep.mubr.msk.f32.mxu0 %vm299_vm3, %v1642_v10  ;;  %v1643_v24 = vmul.f32 %v3684_v16, %v3674_v61 }
0x14e5   :  { %v3454_v15 = vpack.c.bf16 %v3599_v11, %v3598_v12 }
0x14e6   :  { %v3602_v18 = vpop.permute.xlu1 %3601  ;;  %v1938_v32 = vpop.permute.xlu0 %1937 }
0x14e7   :  { %v3604_v22 = vunpack.i.h.bf16 %v3602_v18  ;;  %v3603_v38 = vunpack.i.l.bf16 %v3602_v18  ;;  %3455 = vmatprep.subr.bf16.mxu0 %v3454_v15 }
0x14e8   :  { %3457 = vmatpush3.bf16.msra.mxu0 %v3454_v15 }
0x14e9   :  { %v3686_v23 = vpop.eup %3685  ;;  %v3464_v25 = vpack.c.bf16 %v3604_v22, %v3603_v38 }
0x14ea   :  { %v3607_v26 = vpop.permute.xlu1 %3606  ;;  %v1846_v27 = vmul.f32 %v3686_v23, %v3678_v1 }
0x14eb   :  { %v3609_v20 = vunpack.i.h.bf16 %v3607_v26  ;;  %v3608_v28 = vunpack.i.l.bf16 %v3607_v26  ;;  %3264 = vmatmul.mubr.msk.f32.vlgmr.msra.gmra.mrb[12].mxu0 %vm299_vm3, %v1643_v24  ;;  %3465 = vmatprep.subr.bf16.mxu0 %v3464_v25 }
0x14ec   :  { %3467 = vmatpush3.bf16.msra.mxu0 %v3464_v25  ;;  %3277 = vmatprep.mubr.msk.f32.mxu0 %vm299_vm3, %v1846_v27 }
0x14ed   :  { %v3688_v29 = vpop.eup %3687  ;;  %v3468_v19 = vpack.c.bf16 %v3609_v20, %v3608_v28 }
0x14ee   :  { %v1847_v30 = vmul.f32 %v3688_v29, %v3680_v3  ;;  %v1936_v31 = vpop.permute.xlu1 %1935 }
0x14ef   :  { %3470 = vmatprep.subr.msk.bf16.mxu0 %vm3947_vm2, %v3468_v19 }
0x14f0   :  { %3278 = vmatmul.mubr.msk.f32.vlgmr.msra.gmra.mrb[14].mxu0 %vm299_vm3, %v1847_v30 }
0x14f1   :  { %3284 = vmatprep.mubr.msk.f32.mxu0 %vm211_vm1, %v1936_v31 }
0x14f5   :  { %3473 = vmatpush3.bf16.xpose.msk.msra.mxu0 %vm3947_vm2, %v3468_v19 }
0x14fc   :  { %3285 = vmatmul.mubr.msk.f32.vlgmr.msra.gmra.mrb[16].mxu0 %vm211_vm1, %v1938_v32 }
0x15be   :  { %v4231_v34 = vpop.f32.mrb[12].mxu0 }
0x15bf   :  { %v4233_v36 = vpop.f32.mrb[13].mxu0 }
0x15c3   :  { %v4235_v37 = vpop.f32.mrb[14].mxu0 }
0x15c4   :  { %v4237_v39 = vpop.f32.mrb[15].mxu0 }
0x15cf   :  { %v3286_v42 = vpop.f32.mrb[16].mxu0 }
0x15d0   :  { %v2027_v43 = vmul.f32 0.35355338, %v3286_v42  ;;  %v2017_v44 = vpop.f32.mrb[17].mxu0 }
0x15d1   :  { %v2026_v46 = vmul.f32 0.35355338, %v2017_v44 }
0x15d2   :  { %v2029_v48 = vadd.f32 %v3721_v47, %v2027_v43 }
0x15d3   :  { %v2028_v35 = vadd.f32 %v3722_v50, %v2026_v46 }
0x15d4   :  { %v2033_v33 = vsel %vm299_vm3, %v2029_v48, -inf }
0x15d5   :  { %2034 = vmax.xlane.f32.xlu0 %v2033_v33  ;;  %v2030_v51 = vsel %vm299_vm3, %v2028_v35, -inf  ;;  %v2970_v33 = vld [vmem:[%s4424_s6 + $0x30] sm:$0xff] }
0x15d6   :  { %2031 = vmax.xlane.f32.xlu1 %v2030_v51 }
0x15e7   :  { %3611 = vrot.lane.b32.xlu1 %v4177_v40, %s4464_s0 }
0x15eb   :  { %2139 = vrot.lane.b32.xlu1 %v4171_v21, %s4465_s20 }
0x15ef   :  { %2141 = vrot.lane.b32.xlu1 %v4169_v17, %s4465_s20 }
0x1662   :  { %v2035_v53 = vpop.xlane.xlu0 %2034 }
0x1663   :  { %v2037_v54 = vsub.f32 %v2029_v48, %v2035_v53  ;;  %v2032_v55 = vpop.xlane.xlu1 %2031  ;;  %v2971_v53 = vld [vmem:[%s4424_s6 + $0x38] sm:$0xff] }
0x1664   :  { %v2036_v56 = vsub.f32 %v2028_v35, %v2032_v55  ;;  %v2968_v35 = vld [vmem:[%s4424_s6 + $0x20] sm:$0xff] }
0x1665   :  { %v2040_v57 = vmul.f32 1.442695, %v2037_v54  ;;  %v3492_v54 = vpack.c.bf16 %v2971_v53, %v2970_v33  ;;  %v2993_v53 = vld [vmem:[%s4430_s12 + $0x68] sm:$0xff] }
0x1666   :  { %v2038_v58 = vmul.f32 1.442695, %v2036_v56 }
0x1667   :  { %3689 = vpow2.f32 %v2040_v57  ;;  %v3612_v59 = vpop.permute.xlu1 %3611 }
0x1668   :  { %v3614_v49 = vunpack.i.h.bf16 %v3612_v59  ;;  %v3613_v60 = vunpack.i.l.bf16 %v3612_v59  ;;  %3691 = vpow2.f32 %v2038_v58 }
0x166a   :  { %v3474_v61 = vpack.c.bf16 %v3614_v49, %v3613_v60 }
0x166b   :  { %v2140_v9 = vpop.permute.xlu1 %2139 }
0x166c   :  { %3475 = vmatprep.subr.bf16.mxu1 %v3474_v61 }
0x166d   :  { %3477 = vmatpush3.bf16.msra.mxu1 %v3474_v61 }
0x166f   :  { %v2142_v0 = vpop.permute.xlu1 %2141 }
0x1671   :  { %v3690_v52 = vpop.eup %3689 }
0x1672   :  { %v2045_v21 = vsel %vm299_vm3, %v3690_v52, 0.0  ;;  %v3692_v41 = vpop.eup %3691 }
0x1673   :  { %2046 = vadd.xlane.f32.xlu0 %v2045_v21  ;;  %v2042_v17 = vsel %vm299_vm3, %v3692_v41, 0.0 }
0x1677   :  { %2043 = vadd.xlane.f32.xlu0 %v2042_v17 }
0x168d   :  { %3616 = vrot.lane.b32.xlu0 %v4177_v40, %s4466_s26 }
0x1700   :  { %v2047_v62 = vpop.xlane.xlu0 %2046 }
0x1701   :  { %3693 = vrcp.f32 %v2047_v62 }
0x1704   :  { %v2044_v63 = vpop.xlane.xlu0 %2043 }
0x1705   :  { %3695 = vrcp.f32 %v2044_v63 }
0x1708   :  { %v3617_v1 = vpop.permute.xlu0 %3616 }
0x1709   :  { %v3619_v2 = vunpack.i.h.bf16 %v3617_v1  ;;  %v3618_v3 = vunpack.i.l.bf16 %v3617_v1 }
0x170b   :  { %v3478_v4 = vpack.c.bf16 %v3619_v2, %v3618_v3  ;;  %v3694_v5 = vpop.eup %3693 }
0x170c   :  { %v2051_v8 = vmul.f32 %v3694_v5, %v3690_v52 }
0x170d   :  { %3480 = vmatprep.subr.msk.bf16.mxu1 %vm3947_vm2, %v3478_v4 }
0x170f   :  { %v3696_v6 = vpop.eup %3695 }
0x1710   :  { %v2050_v7 = vmul.f32 %v3696_v6, %v3692_v41 }
0x1712   :  { %3291 = vmatprep.mubr.msk.f32.mxu1 %vm299_vm3, %v2050_v7 }
0x1713   :  { %3292 = vmatmul.mubr.msk.f32.vlgmr.msra.gmra.mrb[18].mxu1 %vm299_vm3, %v2051_v8 }
0x1714   :  { %3483 = vmatpush3.bf16.xpose.msk.msra.mxu1 %vm3947_vm2, %v3478_v4  ;;  %3298 = vmatprep.mubr.msk.f32.mxu1 %vm211_vm1, %v2140_v9 }
0x171b   :  { %3299 = vmatmul.mubr.msk.f32.vlgmr.msra.gmra.mrb[20].mxu1 %vm211_vm1, %v2142_v0 }
0x17e6   :  { %v3293_v10 = vpop.f32.mrb[18].mxu1 }
0x17e7   :  { %v2130_v11 = vpop.f32.mrb[19].mxu1 }
0x17ee   :  { %v3300_v12 = vpop.f32.mrb[20].mxu1 }
0x17ef   :  { %v2231_v15 = vmul.f32 0.35355338, %v3300_v12  ;;  %v2221_v16 = vpop.f32.mrb[21].mxu1 }
0x17f0   :  { %v2230_v18 = vmul.f32 0.35355338, %v2221_v16 }
0x17f1   :  { %v2233_v22 = vadd.f32 %v3721_v47, %v2231_v15 }
0x17f2   :  { %v2232_v38 = vadd.f32 %v3722_v50, %v2230_v18 }
0x17f3   :  { %v2237_v23 = vsel %vm299_vm3, %v2233_v22, -inf }
0x17f4   :  { %2238 = vmax.xlane.f32.xlu0 %v2237_v23  ;;  %v2234_v24 = vsel %vm299_vm3, %v2232_v38, -inf  ;;  %v2982_v23 = vld [vmem:[%s4428_s10 + $0x30] sm:$0xff] }
0x17f5   :  { %2235 = vmax.xlane.f32.xlu1 %v2234_v24  ;;  %v2983_v24 = vld [vmem:[%s4428_s10 + $0x38] sm:$0xff] }
0x1806   :  { %3621 = vrot.lane.b32.xlu1 %v4177_v40, %s4467_s28 }
0x180a   :  { %2347 = vrot.lane.b32.xlu1 %v4235_v37, %s4468_s30 }
0x180e   :  { %2353 = vrot.lane.b32.xlu1 %v2130_v11, %s4469_s21 }
0x1812   :  { %2355 = vrot.lane.b32.xlu1 %v3293_v10, %s4469_s21 }
0x1881   :  { %v2239_v45 = vpop.xlane.xlu0 %2238 }
0x1882   :  { %v2241_v25 = vsub.f32 %v2233_v22, %v2239_v45  ;;  %v2236_v26 = vpop.xlane.xlu1 %2235  ;;  %v2981_v22 = vld [vmem:[%s4428_s10 + $0x28] sm:$0xff]  ;;  %v3500_v45 = vpack.c.bf16 %v2983_v24, %v2982_v23  ;;  %v2767_v24 = vld [vmem:[%s4434_s16] sm:$0xff] }
0x1883   :  { %v2240_v27 = vsub.f32 %v2232_v38, %v2236_v26 }
0x1884   :  { %v2244_v20 = vmul.f32 1.442695, %v2241_v25 }
0x1885   :  { %v2242_v28 = vmul.f32 1.442695, %v2240_v27 }
0x1886   :  { %v3622_v29 = vpop.permute.xlu1 %3621 }
0x1887   :  { %3697 = vpow2.f32 %v2242_v28  ;;  %v3624_v19 = vunpack.i.h.bf16 %v3622_v29  ;;  %v3623_v30 = vunpack.i.l.bf16 %v3622_v29 }
0x1888   :  { %3699 = vpow2.f32 %v2244_v20 }
0x1889   :  { %v3484_v31 = vpack.c.bf16 %v3624_v19, %v3623_v30  ;;  %v2978_v30 = vld [vmem:[%s4426_s8 + $0x1] ss:$0 sm:$0xff] }
0x188a   :  { %v2348_v57 = vpop.permute.xlu1 %2347 }
0x188b   :  { %3485 = vmatprep.subr.bf16.mxu0 %v3484_v31  ;;  %v2368_v52 = vsel %vm211_vm1, %v4231_v34, %v2348_v57 }
0x188c   :  { %3487 = vmatpush3.bf16.msra.mxu0 %v3484_v31 }
0x188e   :  { %v2354_v58 = vpop.permute.xlu1 %2353 }
0x1891   :  { %v3698_v40 = vpop.eup %3697 }
0x1892   :  { %v2246_v32 = vsel %vm299_vm3, %v3698_v40, 0.0  ;;  %v3700_v37 = vpop.eup %3699  ;;  %v2356_v49 = vpop.permute.xlu1 %2355 }
0x1893   :  { %2247 = vadd.xlane.f32.xlu0 %v2246_v32  ;;  %v2249_v42 = vsel %vm299_vm3, %v3700_v37, 0.0  ;;  %v2370_v17 = vsel %vm299_vm3, %v2368_v52, %v2356_v49 }
0x1897   :  { %2250 = vadd.xlane.f32.xlu0 %v2249_v42 }
0x18ad   :  { %2345 = vrot.lane.b32.xlu0 %v4237_v39, %s4468_s30  ;;  %v2969_v39 = vld [vmem:[%s4424_s6 + $0x28] sm:$0xff] }
0x18ae   :  { %v3488_v51 = vpack.c.bf16 %v2969_v39, %v2968_v35  ;;  %v2990_v35 = vld [vmem:[%s4430_s12 + $0x50] sm:$0xff]  ;;  %v2991_v39 = vld [vmem:[%s4430_s12 + $0x58] sm:$0xff] }
0x18af   :  { %v3508_v33 = vpack.c.bf16 %v2991_v39, %v2990_v35 }
0x18b0   :  { %3489 = vmatprep.subr.bf16.mxu0 %v3488_v51 }
0x1920   :  { %v2248_v43 = vpop.xlane.xlu0 %2247 }
0x1921   :  { %3701 = vrcp.f32 %v2248_v43 }
0x1924   :  { %v2251_v44 = vpop.xlane.xlu0 %2250 }
0x1925   :  { %3703 = vrcp.f32 %v2251_v44 }
0x1928   :  { %v2346_v59 = vpop.permute.xlu0 %2345 }
0x1929   :  { %v2367_v60 = vsel %vm211_vm1, %v4233_v36, %v2346_v59  ;;  %v2973_v36 = vld [vmem:[%s4425_s7 + $0x1] ss:$0 sm:$0xff] }
0x192a   :  { %v2369_v21 = vsel %vm299_vm3, %v2367_v60, %v2354_v58  ;;  %v2985_v58 = vld [vmem:[%s4429_s11 + $0x1] ss:$0 sm:$0xff] }
0x192b   :  { %v3702_v46 = vpop.eup %3701 }
0x192c   :  { %v2254_v47 = vmul.f32 %v3702_v46, %v3698_v40  ;;  %v2979_v40 = vld [vmem:[%s4427_s9 + $0x1] ss:$0 sm:$0xff] }
0x192e   :  { %3305 = vmatprep.mubr.msk.f32.mxu0 %vm299_vm3, %v2254_v47  ;;  %v2988_v47 = vld [vmem:[%s4430_s12 + $0x40] sm:$0xff] }
0x192f   :  { %v3704_v48 = vpop.eup %3703 }
0x1930   :  { %v2255_v50 = vmul.f32 %v3704_v48, %v3700_v37  ;;  %v2989_v48 = vld [vmem:[%s4430_s12 + $0x48] sm:$0xff] }
0x1932   :  { %3306 = vmatmul.mubr.msk.f32.vlgmr.msra.gmra.mrb[18].mxu0 %vm299_vm3, %v2255_v50  ;;  %v3504_v50 = vpack.c.bf16 %v2989_v48, %v2988_v47 }
0x1933   :  { %3491 = vmatpush3.bf16.msra.mxu0 %v3488_v51  ;;  %v2992_v51 = vld [vmem:[%s4430_s12 + $0x60] sm:$0xff] }
0x1934   :  { %3493 = vmatprep.subr.bf16.mxu0 %v3492_v54 }
0x1937   :  { %3495 = vmatpush3.bf16.msra.mxu0 %v3492_v54  ;;  %v3512_v54 = vpack.c.bf16 %v2993_v53, %v2992_v51 }
0x1938   :  { %3505 = vmatprep.subr.bf16.mxu0 %v3504_v50 }
0x1a05   :  { %v3307_v55 = vpop.f32.mrb[18].mxu0 }
0x1a06   :  { %2363 = vrot.lane.b32.xlu1 %v3307_v55, %s4470_s23  ;;  %v2334_v56 = vpop.f32.mrb[19].mxu0  ;;  %v2994_v55 = vld [vmem:[%s4430_s12 + $0x70] sm:$0xff] }
0x1a07   :  { %2361 = vrot.lane.b32.xlu0 %v2334_v56, %s4470_s23  ;;  %v2995_v56 = vld [vmem:[%s4430_s12 + $0x78] sm:$0xff] }
0x1a08   :  { %v3516_v57 = vpack.c.bf16 %v2995_v56, %v2994_v55 }
0x1a78   :  { %v2364_v61 = vpop.permute.xlu1 %2363 }
0x1a79   :  { %v2362_v41 = vpop.permute.xlu0 %2361  ;;  %v2372_v63 = vsel %vm1049_vm4, %v2370_v17, %v2364_v61 }
0x1a7a   :  { %v2371_v62 = vsel %vm1049_vm4, %v2369_v21, %v2362_v41 }
0x1a7b   :  { %3316 = vmatprep.mubr.msk.f32.mxu0 %vm69_vm0, %v2371_v62 }
0x1a7c   :  { %3317 = vmatmul.mubr.msk.f32.vlgmr.msra.gmra.mrb[20].mxu0 %vm69_vm0, %v2372_v63 }
0x1a7d   :  { %3507 = vmatpush3.bf16.msra.mxu0 %v3504_v50 }
0x1a7e   :  { %3509 = vmatprep.subr.bf16.mxu0 %v3508_v33 }
0x1a81   :  { %3511 = vmatpush3.bf16.msra.mxu0 %v3508_v33 }
0x1a82   :  { %3513 = vmatprep.subr.bf16.mxu0 %v3512_v54 }
0x1a85   :  { %3515 = vmatpush3.bf16.msra.mxu0 %v3512_v54 }
0x1a86   :  { %3517 = vmatprep.subr.bf16.mxu0 %v3516_v57 }
0x1a89   :  { %3519 = vmatpush3.bf16.msra.mxu0 %v3516_v57 }
0x1b4f   :  { %v3318_v1 = vpop.f32.mrb[20].mxu0 }
0x1b50   :  { %v2464_v2 = vadd.f32 %v3318_v1, %v2973_v36  ;;  %v2458_v34 = vpop.f32.mrb[21].mxu0 }
0x1b51   :  { %v2459_v3 = vadd.f32 %v2973_v36, %v2458_v34 }
0x1b52   :  { %v2468_v4 = vadd.f32 %v2464_v2, %v4160_v14 }
0x1b53   :  { %v2467_v5 = vadd.f32 %v2459_v3, %v4158_v13  ;;  %v2980_v13 = vld [vmem:[%s4428_s10 + $0x20] sm:$0xff] }
0x1b54   :  { %v2476_v6 = vsel %vm69_vm0, %v2468_v4, 0.0  ;;  %v3496_v38 = vpack.c.bf16 %v2981_v22, %v2980_v13  ;;  %v2997_v3 = vld [vmem:[%s4431_s13 + $0x1] ss:$0 sm:$0xff] }
0x1b55   :  { %2477 = vadd.xlane.f32.xlu1 %v2476_v6  ;;  %v2473_v7 = vsel %vm69_vm0, %v2467_v5, 0.0 }
0x1b56   :  { %2474 = vadd.xlane.f32.xlu0 %v2473_v7  ;;  %3497 = vmatprep.subr.bf16.mxu1 %v3496_v38 }
0x1b57   :  { %3499 = vmatpush3.bf16.msra.mxu1 %v3496_v38 }
0x1b58   :  { %3501 = vmatprep.subr.bf16.mxu1 %v3500_v45 }
0x1b5b   :  { %3503 = vmatpush3.bf16.msra.mxu1 %v3500_v45  ;;  %v2768_v45 = vld [vmem:[%s4434_s16 + $0x8] sm:$0xff] }
0x1be2   :  { %v2478_v8 = vpop.xlane.xlu1 %2477 }
0x1be3   :  { %v2480_v9 = vmul.f32 0.03125, %v2478_v8  ;;  %v2475_v0 = vpop.xlane.xlu0 %2474 }
0x1be4   :  { %v2479_v10 = vmul.f32 0.03125, %v2475_v0 }
0x1be5   :  { %v2482_v11 = vsub.f32 %v2468_v4, %v2480_v9 }
0x1be6   :  { %v2481_v12 = vsub.f32 %v2467_v5, %v2479_v10 }
0x1be7   :  { %v2484_v18 = vmul.f32 %v2482_v11, %v2482_v11 }
0x1be8   :  { %v2483_v15 = vmul.f32 %v2481_v12, %v2481_v12 }
0x1be9   :  { %v2488_v14 = vsel %vm69_vm0, %v2484_v18, 0.0 }
0x1bea   :  { %v2485_v16 = vsel %vm69_vm0, %v2483_v15, 0.0 }
0x1beb   :  { %2486 = vadd.xlane.f32.xlu0 %v2485_v16 }
0x1bef   :  { %2489 = vadd.xlane.f32.xlu0 %v2488_v14 }
0x1c78   :  { %v2487_v25 = vpop.xlane.xlu0 %2486 }
0x1c79   :  { %v2491_v26 = vmul.f32 0.03125, %v2487_v25  ;;  %v3520_v25 = vpack.c.bf16 %v2768_v45, %v2767_v24 }
0x1c7b   :  { %v2493_v27 = vadd.f32 1e-12, %v2491_v26  ;;  %3521 = vmatprep.subr.bf16.mxu1 %v3520_v25  ;;  %v2769_v26 = vld [vmem:[%s4434_s16 + $0x10] sm:$0xff] }
0x1c7c   :  { %v2490_v20 = vpop.xlane.xlu0 %2489 }
0x1c7d   :  { %3705 = vrsqrt.f32 %v2493_v27  ;;  %v2492_v28 = vmul.f32 0.03125, %v2490_v20  ;;  %v2770_v27 = vld [vmem:[%s4434_s16 + $0x18] sm:$0xff] }
0x1c7e   :  { %v3524_v20 = vpack.c.bf16 %v2770_v27, %v2769_v26 }
0x1c7f   :  { %v2494_v29 = vadd.f32 1e-12, %v2492_v28 }
0x1c81   :  { %3707 = vrsqrt.f32 %v2494_v29 }
0x1c87   :  { %v3706_v19 = vpop.eup %3705 }
0x1c88   :  { %v2497_v31 = vmul.f32 %v3706_v19, %v2481_v12 }
0x1c8a   :  { %v2505_v32 = vmul.f32 %v2978_v30, %v2497_v31 }
0x1c8b   :  { %v3708_v37 = vpop.eup %3707 }
0x1c8c   :  { %v2498_v42 = vmul.f32 %v3708_v37, %v2482_v11  ;;  %v2513_v43 = vadd.f32 %v2979_v40, %v2505_v32  ;;  %v3002_v37 = vld [vmem:[%s4432_s14 + $0x1] ss:$0 sm:$0xff]  ;;  %s3785_s14 = smov [#allocation2]  }
0x1c8d   :  { %s2869_s6 = sshll.u32 %s3785_s14, 4  ;;  %s2870_s6 = int_to_ptr.vmem [resolvable:$true] %s2869_s6 }
0x1c8e   :  { %v2506_v44 = vmul.f32 %v2978_v30, %v2498_v42  ;;  %3327 = vmatprep.mubr.msk.f32.mxu1 %vm69_vm0, %v2513_v43  ;;  %s3723_s24 = scalar_lea.vmem %s2870_s6, 256  ;;  %p3728_p1 = scmp.lt.s32.totalorder %s2870_s6, %s2870_s6 }
0x1c8f   :  { %p3724_p0 = scmp.ne.s32.totalorder %s2870_s6, %s3723_s24  ;;  %p3729_p2 = scmp.lt.s32.totalorder %s3723_s24, %s3723_s24 }
0x1c90   :  { %v2514_v46 = vadd.f32 %v2979_v40, %v2506_v44  ;;  %v3003_v44 = vld [vmem:[%s4433_s15 + $0x1] ss:$0 sm:$0xff] }
0x1c91   :  { %p3730_p3 = por %p3729_p2, %p3728_p1 }
0x1c92   :  { %3328 = vmatmul.mubr.msk.f32.vlgmr.msra.gmra.mrb[22].mxu1 %vm69_vm0, %v2514_v46 }
0x1c93   :  { %3523 = vmatpush3.bf16.msra.mxu1 %v3520_v25  ;;  %p3731_p4 = pnand %p3730_p3, %p3724_p0 }
0x1c94   :  { %3525 = vmatprep.subr.bf16.mxu1 %v3524_v20 }
0x1c97   :  { %3527 = vmatpush3.bf16.msra.mxu1 %v3524_v20 }
0x1d65   :  { %v3329_v59 = vpop.f32.mrb[22].mxu1 }
0x1d66   :  { %v2606_v49 = vadd.f32 %v3329_v59, %v2985_v58  ;;  %v2600_v60 = vpop.f32.mrb[23].mxu1 }
0x1d67   :  { %v2601_v61 = vadd.f32 %v2985_v58, %v2600_v60 }
0x1d68   :  { %v2612_v52 = vmul.f32 0.70710677, %v2606_v49  ;;  %v2610_v1 = vmul.f32 0.5, %v2606_v49 }
0x1d69   :  { %v2611_v21 = vmul.f32 0.70710677, %v2601_v61  ;;  %v2609_v63 = vmul.f32 0.5, %v2601_v61 }
0x1d6a   :  { %3709 = verf.f32 %v2612_v52 }
0x1d6b   :  { %3711 = verf.f32 %v2611_v21 }
0x1d74   :  { %v3710_v41 = vpop.eup %3709 }
0x1d75   :  { %v3712_v17 = vpop.eup %3711  ;;  %v2616_v62 = vadd.f32 1.0, %v3710_v41 }
0x1d76   :  { %v2615_v36 = vadd.f32 1.0, %v3712_v17 }
0x1d77   :  { %v2618_v34 = vmul.f32 %v2616_v62, %v2610_v1 }
0x1d78   :  { %v2617_v2 = vmul.f32 %v2615_v36, %v2609_v63 }
0x1d7a   :  { %3346 = vmatprep.mubr.msk.f32.mxu0 %vm1307_vm5, %v2617_v2 }
0x1d7b   :  { %3347 = vmatmul.mubr.msk.f32.vlgmr.msra.gmra.mrb[22].mxu0 %vm1307_vm5, %v2618_v34 }
0x1e4e   :  { %v3348_v4 = vpop.f32.mrb[22].mxu0 }
0x1e4f   :  { %v2714_v5 = vadd.f32 %v3348_v4, %v2997_v3  ;;  %v2708_v6 = vpop.f32.mrb[23].mxu0 }
0x1e50   :  { %v2709_v7 = vadd.f32 %v2997_v3, %v2708_v6 }
0x1e51   :  { %v2718_v8 = vadd.f32 %v2714_v5, %v2514_v46 }
0x1e52   :  { %v2717_v9 = vadd.f32 %v2709_v7, %v2513_v43 }
0x1e53   :  { %v2726_v0 = vsel %vm69_vm0, %v2718_v8, 0.0 }
0x1e54   :  { %2727 = vadd.xlane.f32.xlu1 %v2726_v0  ;;  %v2723_v10 = vsel %vm69_vm0, %v2717_v9, 0.0 }
0x1e55   :  { %2724 = vadd.xlane.f32.xlu0 %v2723_v10 }
0x1ee1   :  { %v2728_v11 = vpop.xlane.xlu1 %2727 }
0x1ee2   :  { %v2730_v12 = vmul.f32 0.03125, %v2728_v11  ;;  %v2725_v15 = vpop.xlane.xlu0 %2724 }
0x1ee3   :  { %v2729_v16 = vmul.f32 0.03125, %v2725_v15 }
0x1ee4   :  { %v2732_v18 = vsub.f32 %v2718_v8, %v2730_v12 }
0x1ee5   :  { %v2731_v14 = vsub.f32 %v2717_v9, %v2729_v16 }
0x1ee6   :  { %v2734_v13 = vmul.f32 %v2732_v18, %v2732_v18 }
0x1ee7   :  { %v2733_v22 = vmul.f32 %v2731_v14, %v2731_v14 }
0x1ee8   :  { %v2738_v38 = vsel %vm69_vm0, %v2734_v13, 0.0 }
0x1ee9   :  { %2739 = vadd.xlane.f32.xlu1 %v2738_v38  ;;  %v2735_v23 = vsel %vm69_vm0, %v2733_v22, 0.0 }
0x1eea   :  { %2736 = vadd.xlane.f32.xlu0 %v2735_v23 }
0x1f76   :  { %v2740_v28 = vpop.xlane.xlu1 %2739 }
0x1f77   :  { %v2742_v29 = vmul.f32 0.03125, %v2740_v28  ;;  %v2737_v19 = vpop.xlane.xlu0 %2736 }
0x1f78   :  { %v2741_v30 = vmul.f32 0.03125, %v2737_v19 }
0x1f79   :  { %v2744_v31 = vadd.f32 1e-12, %v2742_v29 }
0x1f7a   :  { %v2743_v40 = vadd.f32 1e-12, %v2741_v30 }
0x1f7b   :  { %3713 = vrsqrt.f32 %v2744_v31 }
0x1f7c   :  { %3715 = vrsqrt.f32 %v2743_v40 }
0x1f85   :  { %v3714_v32 = vpop.eup %3713 }
0x1f86   :  { %v3716_v42 = vpop.eup %3715  ;;  %v2748_v43 = vmul.f32 %v3714_v32, %v2732_v18 }
0x1f87   :  { %v2747_v46 = vmul.f32 %v3716_v42, %v2731_v14 }
0x1f88   :  { %v2756_v47 = vmul.f32 %v3002_v37, %v2748_v43 }
0x1f89   :  { %v2755_v48 = vmul.f32 %v3002_v37, %v2747_v46 }
0x1f8a   :  { %v2764_v50 = vadd.f32 %v3003_v44, %v2756_v47 }
0x1f8b   :  { %v2763_v35 = vadd.f32 %v3003_v44, %v2755_v48 }
0x1f8c   :  { %2766 = vst.msk [vmem:[#allocation2 + $0x8] sm:$0xff] %vm69_vm0, %v2764_v50 }
0x1f8d   :  { %3357 = vmatprep.mubr.msk.f32.mxu1 %vm69_vm0, %v2763_v35  ;;  %2765 = vst.msk [vmem:[#allocation2] sm:$0xff] %vm69_vm0, %v2763_v35 }
0x1f8e   :  { %3358 = vmatmul.mubr.msk.f32.vlgmr.msra.gmra.mrb[24].mxu1 %vm69_vm0, %v2764_v50 }
0x1f8f   :  { %3734 = shalt.err (!%p3731_p4)
}
0x1f90   :  { %s3735_s29 = scalar_lea.hbm %s4436_s18, 256 }
0x1f91   :  { %p3736_p5 = scmp.ne.s32.totalorder %s4436_s18, %s3735_s29  ;;  %p3739_p6 = scmp.lt.u32.totalorder %s3735_s29, %s4436_s18 }
0x1f93   :  { %p3741_p7 = pnand %p3739_p6, %p3736_p5 }
0x1f95   :  { %3744 = shalt.err (!%p3741_p7)
}
0x1f96   :  { %s3786_s21 = smov 128   ;;  %v3004_v39 = vld [vmem:[%s4435_s17] ss:$0 sm:$0xff]  ;;  %s3787_s13 = smov [#allocation4]   ;;  %vm2861_vm6 = vcmask 253952  }
0x1f97   :  { %2875 = dma.vmem_to_hbm [thread:$0]  %s2870_s6, 256, %s4436_s18, [#allocation3], %s3786_s21, %s3786_s21, %s4468_s30  }
0x1f98   :  { %s2882_s4 = sshll.u32 %s3787_s13, 4  ;;  %s2883_s4 = int_to_ptr.vmem [resolvable:$true] %s2882_s4 }
0x1f99   :  { %s3745_s25 = scalar_lea.vmem %s2883_s4, 32  ;;  %p3750_p9 = scmp.lt.s32.totalorder %s2883_s4, %s2883_s4 }
0x1f9a   :  { %p3746_p8 = scmp.ne.s32.totalorder %s2883_s4, %s3745_s25  ;;  %p3751_p10 = scmp.lt.s32.totalorder %s3745_s25, %s3745_s25 }
0x1f9c   :  { %p3752_p11 = por %p3751_p10, %p3750_p9 }
0x1f9e   :  { %p3753_p12 = pnand %p3752_p11, %p3746_p8 }
0x2061   :  { %v3359_v33 = vpop.f32.mrb[24].mxu1 }
0x2062   :  { %v2856_v51 = vadd.f32 %v3359_v33, %v3004_v39  ;;  %v2850_v53 = vpop.f32.mrb[25].mxu1 }
0x2063   :  { %v2851_v54 = vadd.f32 %v3004_v39, %v2850_v53 }
0x2064   :  { %3717 = vtanh.f32 %v2856_v51 }
0x2065   :  { %3719 = vtanh.f32 %v2851_v54 }
0x206e   :  { %v3718_v55 = vpop.eup %3717 }
0x206f   :  { %v3720_v56 = vpop.eup %3719  ;;  %2863 = vst.msk [vmem:[#allocation4 + $0x1] sm:$0x1] %vm2861_vm6, %v3718_v55 }
0x2070   :  { %2862 = vst.msk [vmem:[#allocation4] sm:$0x1] %vm2861_vm6, %v3720_v56 }
0x2071   :  { %3756 = shalt.err (!%p3753_p12)
}
0x2072   :  { %s3757_s30 = scalar_lea.hbm %s4437_s19, 32 }
0x2073   :  { %p3758_p13 = scmp.ne.s32.totalorder %s4437_s19, %s3757_s30  ;;  %p3761_p0 = scmp.lt.u32.totalorder %s3757_s30, %s4437_s19 }
0x2075   :  { %p3763_p1 = pnand %p3761_p0, %p3758_p13 }
0x2077   :  { %3766 = shalt.err (!%p3763_p1)
}
0x2078   :  { %2885 = dma.vmem_to_hbm [thread:$0]  %s2883_s4, 32, %s4437_s19, [#allocation5]  }
0x2079   :  { %3767 = dma.done.wait [#allocation3], 256  }
0x207a   :  { %3768 = vsyncadd [#allocation3], 4294967040 }
0x207b   :  { %3769 = dma.done.wait [#allocation5], 32  }
0x207c   :  { %3770 = vsyncadd [#allocation5], 4294967264 }
0x207d   :  { %2892 = vsyncpa [#allocation3], 1 }
0x207e   :  { %2893 = vsyncpa [#allocation5], 1 }

</bundles_post_ra>
